<compile_context>
chip_gen: v7x
topology: tpu7x:2x2x1
jax: 0.10.0
libtpu: 0.0.40
codegen_flags: <defaults>
</compile_context>

<pallas_src>
import math
import jax
import jax.numpy as jnp
from jax import lax
from jax.experimental import pallas as pl
from jax.experimental.pallas import tpu as pltpu


# ---------------------------------------------------------------------------
# Fused kernel: GRU encoder scan + row-normalize + ReLU(Linear) + 4 heads
# ---------------------------------------------------------------------------
def _f1mlp_kernel(x_ref, a_ref, h0_ref,
                  wih_xT_ref, wih_aT_ref, bi_ref,
                  whhT_ref, bhn_ref,
                  w1T_ref, b1_ref, whT_ref, bh_ref,
                  hn_ref, heads_ref):
    seq = x_ref.shape[0]
    H = h0_ref.shape[-1]

    # GRU weights: load once, stay resident in vregs for the whole seq loop.
    wih_x = wih_xT_ref[...]      # (Dx, 3H)   concat([x, a]) @ W_ih realized as
    wih_a = wih_aT_ref[...]      # (Da, 3H)   x @ W_ih[:Dx] + a @ W_ih[Dx:]
    whh = whhT_ref[...]          # (H, 3H)
    bi = bi_ref[...]             # (1, 3H)    = b_ih + [b_hr, b_hz, 0]
    bhn = bhn_ref[...]           # (1, H)     = b_hn (must stay inside r*(...))

    def gru_step(t, h):
        # Input projection is independent of h -> schedulable off the serial chain.
        gi = (jnp.dot(x_ref[t], wih_x, preferred_element_type=jnp.float32)
              + jnp.dot(a_ref[t], wih_a, preferred_element_type=jnp.float32)
              + bi)
        gh = jnp.dot(h, whh, preferred_element_type=jnp.float32)
        r = jax.nn.sigmoid(gi[:, 0 * H:1 * H] + gh[:, 0 * H:1 * H])
        z = jax.nn.sigmoid(gi[:, 1 * H:2 * H] + gh[:, 1 * H:2 * H])
        n = jnp.tanh(gi[:, 2 * H:3 * H] + r * (gh[:, 2 * H:3 * H] + bhn))
        return n + z * (h - n)                 # == (1-z)*n + z*h

    # Recurrence carried in vregs; unrolled for LLO scheduler visibility.
    h = lax.fori_loop(0, seq, gru_step, h0_ref[...], unroll=True)
    hn_ref[...] = h

    # x = x / torch.norm(x, p=2, dim=-1, keepdim=True): XLU reduce + EUP rsqrt.
    xn = h * lax.rsqrt(jnp.sum(h * h, axis=-1, keepdims=True))

    # Hidden layer (num_layers == 1 default): ReLU(Linear)
    hid = jnp.maximum(
        jnp.dot(xn, w1T_ref[...], preferred_element_type=jnp.float32) + b1_ref[...],
        0.0)

    # Four scalar heads fused into one (hidden, 4) matmul.
    # Columns: [acc_mean, acc_sde, ste_mean, ste_sde]; tanh on column 2 only.
    raw = jnp.dot(hid, whT_ref[...], preferred_element_type=jnp.float32) + bh_ref[...]
    col = lax.broadcasted_iota(jnp.int32, raw.shape, dimension=1)
    heads_ref[...] = jnp.where(col == 2, jnp.tanh(raw), raw)
    # NOTE: out_size=4 -> masked lane store; negligible at this scale. Pad/stack
    # heads toward 128 lanes if this ever runs at production width.


# ---------------------------------------------------------------------------
# One-time parameter preparation (NOT on the per-call hot path).
# Converts torch nn.Linear / nn.GRU (out_features, in_features) weights to the
# (in, out) orientation the kernel consumes, splits W_ih by input source, and
# folds b_hr / b_hz into the input bias (b_hn stays separate: PyTorch GRU
# applies it inside r * (W_hn h + b_hn)).
# ---------------------------------------------------------------------------
def prepare_params(W_ih, b_ih, W_hh, b_hh, W1, b1, W_heads, b_heads, *, d_x):
    W_ihT = jnp.asarray(W_ih, jnp.float32).T             # (Dx+Da, 3H)
    b_ih = jnp.asarray(b_ih, jnp.float32)                # (3H,)
    b_hh = jnp.asarray(b_hh, jnp.float32)                # (3H,)
    H = b_hh.shape[0] // 3
    bi_fused = b_ih + jnp.concatenate(
        [b_hh[:2 * H], jnp.zeros((H,), jnp.float32)])    # fold b_hr, b_hz
    return dict(
        wih_xT=W_ihT[:d_x],                              # (Dx, 3H)
        wih_aT=W_ihT[d_x:],                              # (Da, 3H)
        bi=bi_fused.reshape(1, -1),                      # (1, 3H)
        whhT=jnp.asarray(W_hh, jnp.float32).T,           # (H, 3H)
        bhn=b_hh[2 * H:].reshape(1, -1),                 # (1, H)
        w1T=jnp.asarray(W1, jnp.float32).T,              # (H, hidden)
        b1=jnp.asarray(b1, jnp.float32).reshape(1, -1),
        wheadsT=jnp.asarray(W_heads, jnp.float32).T,     # (hidden, 4)
        bheads=jnp.asarray(b_heads, jnp.float32).reshape(1, -1),
    )


# ---------------------------------------------------------------------------
# Forward wrapper: one pallas_call for the whole module forward.
# ---------------------------------------------------------------------------
@jax.jit
def f1mlp_forward(x, a, h0, params):
    seq, B, Dx = x.shape
    Da = a.shape[-1]
    H = h0.shape[-1]

    # Batch tiling: full batch per tile while small; 128-row tiles when large.
    BB = B if B <= 128 else 128
    assert B % BB == 0, "batch must be a multiple of the 128-row tile when > 128"
    grid = (B // BB,)

    def full2d(arr):   # whole (small) parameter resident in VMEM every step
        return pl.BlockSpec(arr.shape, lambda b: (0, 0))

    hn, heads = pl.pallas_call(
        _f1mlp_kernel,
        out_shape=(jax.ShapeDtypeStruct((B, H), jnp.float32),
                   jax.ShapeDtypeStruct((B, 4), jnp.float32)),
        grid=grid,
        in_specs=[
            pl.BlockSpec((seq, BB, Dx), lambda b: (0, b, 0)),
            pl.BlockSpec((seq, BB, Da), lambda b: (0, b, 0)),
            pl.BlockSpec((BB, H), lambda b: (b, 0)),
            full2d(params["wih_xT"]),
            full2d(params["wih_aT"]),
            full2d(params["bi"]),
            full2d(params["whhT"]),
            full2d(params["bhn"]),
            full2d(params["w1T"]),
            full2d(params["b1"]),
            full2d(params["wheadsT"]),
            full2d(params["bheads"]),
        ],
        out_specs=(pl.BlockSpec((BB, H), lambda b: (b, 0)),
                   pl.BlockSpec((BB, 4), lambda b: (b, 0))),
        compiler_params=pltpu.CompilerParams(
            dimension_semantics=("parallel",)),
    )(x, a, h0,
      params["wih_xT"], params["wih_aT"], params["bi"],
      params["whhT"], params["bhn"],
      params["w1T"], params["b1"], params["wheadsT"], params["bheads"])

    acc_mean = heads[:, 0:1]
    acc_sde = heads[:, 1:2]
    ste_mean = heads[:, 2:3]     # tanh already applied in-kernel
    ste_sde = heads[:, 3:4]
    # h_n returned in torch-GRU convention (num_layers=1): (1, B, H)
    return hn[None], (acc_mean, acc_sde), (ste_mean, ste_sde)
    # TODO(synk): num_layers > 1 hidden stack and the use_gru=False /
    # partial_forward encoder branch are not implemented (external encoder is
    # unspecified; modeled here as a single-layer GRU over concat([x, a])).


if __name__ == "__main__":
    key = jax.random.PRNGKey(0)
    seq, B = 8, 2
    Dx, Da = 6, 4            # encoder observation / action feature dims
    H = 32                   # encoder hidden == in_size of first Linear
    HID = 40                 # hidden_size (module default)

    ks = jax.random.split(key, 10)
    x = jax.random.normal(ks[0], (seq, B, Dx), jnp.float32)
    a = jax.random.normal(ks[1], (seq, B, Da), jnp.float32)
    h0 = jnp.zeros((B, H), jnp.float32)

    # Synthetic parameters in PyTorch layout (GRU: (3H, in); Linear: (out, in)).
    W_ih = jax.random.normal(ks[2], (3 * H, Dx + Da), jnp.float32) * 0.2
    b_ih = jax.random.normal(ks[3], (3 * H,), jnp.float32) * 0.1
    W_hh = jax.random.normal(ks[4], (3 * H, H), jnp.float32) * 0.2
    b_hh = jax.random.normal(ks[5], (3 * H,), jnp.float32) * 0.1
    W1 = jax.random.normal(ks[6], (HID, H), jnp.float32) / math.sqrt(H)
    b1 = jax.random.normal(ks[7], (HID,), jnp.float32) * 0.05
    W_heads = jax.random.normal(ks[8], (4, HID), jnp.float32) / math.sqrt(HID)
    b_heads = jax.random.normal(ks[9], (4,), jnp.float32) * 0.05

    params = prepare_params(W_ih, b_ih, W_hh, b_hh, W1, b1, W_heads, b_heads, d_x=Dx)

    h_n, (acc_mean, acc_sde), (ste_mean, ste_sde) = f1mlp_forward(x, a, h0, params)
    jax.block_until_ready((h_n, acc_mean, acc_sde, ste_mean, ste_sde))

    assert h_n.shape == (1, B, H)
    assert acc_mean.shape == (B, 1) and acc_sde.shape == (B, 1)
    assert ste_mean.shape == (B, 1) and ste_sde.shape == (B, 1)
    assert bool(jnp.all(jnp.abs(ste_mean) <= 1.0))        # tanh head bounded
    assert bool(jnp.all(jnp.isfinite(h_n)))
    print("KERNEL_OK")
</pallas_src>

<mosaic_0001>
module attributes {stable_mosaic.version = 11 : i64} {
  func.func @_f1mlp_kernel(%arg0: i32, %arg1: memref<8x2x6xf32, #tpu.memory_space<vmem>>, %arg2: memref<8x2x4xf32, #tpu.memory_space<vmem>>, %arg3: memref<2x32xf32, #tpu.memory_space<vmem>>, %arg4: memref<6x96xf32, #tpu.memory_space<vmem>>, %arg5: memref<4x96xf32, #tpu.memory_space<vmem>>, %arg6: memref<1x96xf32, #tpu.memory_space<vmem>>, %arg7: memref<32x96xf32, #tpu.memory_space<vmem>>, %arg8: memref<1x32xf32, #tpu.memory_space<vmem>>, %arg9: memref<32x40xf32, #tpu.memory_space<vmem>>, %arg10: memref<1x40xf32, #tpu.memory_space<vmem>>, %arg11: memref<40x4xf32, #tpu.memory_space<vmem>>, %arg12: memref<1x4xf32, #tpu.memory_space<vmem>>, %arg13: memref<2x32xf32, #tpu.memory_space<vmem>>, %arg14: memref<2x4xf32, #tpu.memory_space<vmem>>) attributes {dimension_semantics = [#tpu.dimension_semantics<parallel>], iteration_bounds = array<i64: 1>, scalar_prefetch = 0 : i64, scratch_operands = 0 : i64, tpu.core_type = #tpu.core_type<tc>, window_params = [{transform_indices = @transform_0, window_bounds = array<i64: 8, 2, 6>}, {transform_indices = @transform_1, window_bounds = array<i64: 8, 2, 4>}, {transform_indices = @transform_2, window_bounds = array<i64: 2, 32>}, {pipeline_mode = #tpu.pipeline_mode<synchronous>, transform_indices = @transform_3, window_bounds = array<i64: 6, 96>}, {pipeline_mode = #tpu.pipeline_mode<synchronous>, transform_indices = @transform_4, window_bounds = array<i64: 4, 96>}, {pipeline_mode = #tpu.pipeline_mode<synchronous>, transform_indices = @transform_5, window_bounds = array<i64: 1, 96>}, {pipeline_mode = #tpu.pipeline_mode<synchronous>, transform_indices = @transform_6, window_bounds = array<i64: 32, 96>}, {pipeline_mode = #tpu.pipeline_mode<synchronous>, transform_indices = @transform_7, window_bounds = array<i64: 1, 32>}, {pipeline_mode = #tpu.pipeline_mode<synchronous>, transform_indices = @transform_8, window_bounds = array<i64: 32, 40>}, {pipeline_mode = #tpu.pipeline_mode<synchronous>, transform_indices = @transform_9, window_bounds = array<i64: 1, 40>}, {pipeline_mode = #tpu.pipeline_mode<synchronous>, transform_indices = @transform_10, window_bounds = array<i64: 40, 4>}, {pipeline_mode = #tpu.pipeline_mode<synchronous>, transform_indices = @transform_11, window_bounds = array<i64: 1, 4>}, {transform_indices = @transform_12, window_bounds = array<i64: 2, 32>}, {transform_indices = @transform_13, window_bounds = array<i64: 2, 4>}]} {
    %c0 = arith.constant 0 : index
    %c0_0 = arith.constant 0 : index
    %0 = vector.load %arg4[%c0, %c0_0] : memref<6x96xf32, #tpu.memory_space<vmem>>, vector<6x96xf32>
    %c0_1 = arith.constant 0 : index
    %c0_2 = arith.constant 0 : index
    %1 = vector.load %arg5[%c0_1, %c0_2] : memref<4x96xf32, #tpu.memory_space<vmem>>, vector<4x96xf32>
    %c0_3 = arith.constant 0 : index
    %c0_4 = arith.constant 0 : index
    %2 = vector.load %arg7[%c0_3, %c0_4] : memref<32x96xf32, #tpu.memory_space<vmem>>, vector<32x96xf32>
    %c0_5 = arith.constant 0 : index
    %c0_6 = arith.constant 0 : index
    %3 = vector.load %arg6[%c0_5, %c0_6] : memref<1x96xf32, #tpu.memory_space<vmem>>, vector<1x96xf32>
    %c0_7 = arith.constant 0 : index
    %c0_8 = arith.constant 0 : index
    %4 = vector.load %arg8[%c0_7, %c0_8] : memref<1x32xf32, #tpu.memory_space<vmem>>, vector<1x32xf32>
    %c0_9 = arith.constant 0 : index
    %c0_10 = arith.constant 0 : index
    %5 = vector.load %arg3[%c0_9, %c0_10] : memref<2x32xf32, #tpu.memory_space<vmem>>, vector<2x32xf32>
    %c0_i32 = arith.constant 0 : i32
    %6 = arith.index_cast %c0_i32 : i32 to index
    %c0_11 = arith.constant 0 : index
    %c0_12 = arith.constant 0 : index
    %7 = vector.load %arg1[%6, %c0_11, %c0_12] : memref<8x2x6xf32, #tpu.memory_space<vmem>>, vector<1x2x6xf32>
    %8 = vector.shape_cast %7 : vector<1x2x6xf32> to vector<2x6xf32>
    %cst = arith.constant dense<0.000000e+00> : vector<2x96xf32>
    %9 = tpu.matmul %8, %0, %cst {dimension_numbers = #tpu.dot_dimension_numbers<[1], [0], [0], [1], [0, 0, 1, 1], [], []>} : vector<2x6xf32>, vector<6x96xf32>, vector<2x96xf32> -> vector<2x96xf32>
    %10 = arith.index_cast %c0_i32 : i32 to index
    %c0_13 = arith.constant 0 : index
    %c0_14 = arith.constant 0 : index
    %11 = vector.load %arg2[%10, %c0_13, %c0_14] : memref<8x2x4xf32, #tpu.memory_space<vmem>>, vector<1x2x4xf32>
    %12 = vector.shape_cast %11 : vector<1x2x4xf32> to vector<2x4xf32>
    %cst_15 = arith.constant dense<0.000000e+00> : vector<2x96xf32>
    %13 = tpu.matmul %12, %1, %cst_15 {dimension_numbers = #tpu.dot_dimension_numbers<[1], [0], [0], [1], [0, 0, 1, 1], [], []>} : vector<2x4xf32>, vector<4x96xf32>, vector<2x96xf32> -> vector<2x96xf32>
    %14 = arith.addf %9, %13 : vector<2x96xf32>
    %15 = vector.broadcast %3 : vector<1x96xf32> to vector<2x96xf32>
    %16 = arith.addf %14, %15 : vector<2x96xf32>
    %cst_16 = arith.constant dense<0.000000e+00> : vector<2x96xf32>
    %17 = tpu.matmul %5, %2, %cst_16 {dimension_numbers = #tpu.dot_dimension_numbers<[1], [0], [0], [1], [0, 0, 1, 1], [], []>} : vector<2x32xf32>, vector<32x96xf32>, vector<2x96xf32> -> vector<2x96xf32>
    %18 = vector.extract_strided_slice %16 {offsets = [0, 0], sizes = [2, 32], strides = [1, 1]} : vector<2x96xf32> to vector<2x32xf32>
    %19 = vector.extract_strided_slice %17 {offsets = [0, 0], sizes = [2, 32], strides = [1, 1]} : vector<2x96xf32> to vector<2x32xf32>
    %20 = arith.addf %18, %19 : vector<2x32xf32>
    %21 = arith.negf %20 : vector<2x32xf32>
    %22 = math.exp %21 : vector<2x32xf32>
    %cst_17 = arith.constant 1.000000e+00 : f32
    %23 = vector.broadcast %cst_17 : f32 to vector<2x32xf32>
    %24 = arith.addf %23, %22 : vector<2x32xf32>
    %25 = arith.divf %23, %24 : vector<2x32xf32>
    %26 = vector.extract_strided_slice %16 {offsets = [0, 32], sizes = [2, 32], strides = [1, 1]} : vector<2x96xf32> to vector<2x32xf32>
    %27 = vector.extract_strided_slice %17 {offsets = [0, 32], sizes = [2, 32], strides = [1, 1]} : vector<2x96xf32> to vector<2x32xf32>
    %28 = arith.addf %26, %27 : vector<2x32xf32>
    %29 = arith.negf %28 : vector<2x32xf32>
    %30 = math.exp %29 : vector<2x32xf32>
    %cst_18 = arith.constant 1.000000e+00 : f32
    %31 = vector.broadcast %cst_18 : f32 to vector<2x32xf32>
    %32 = arith.addf %31, %30 : vector<2x32xf32>
    %33 = arith.divf %31, %32 : vector<2x32xf32>
    %34 = vector.extract_strided_slice %16 {offsets = [0, 64], sizes = [2, 32], strides = [1, 1]} : vector<2x96xf32> to vector<2x32xf32>
    %35 = vector.extract_strided_slice %17 {offsets = [0, 64], sizes = [2, 32], strides = [1, 1]} : vector<2x96xf32> to vector<2x32xf32>
    %36 = vector.broadcast %4 : vector<1x32xf32> to vector<2x32xf32>
    %37 = arith.addf %35, %36 : vector<2x32xf32>
    %38 = arith.mulf %25, %37 : vector<2x32xf32>
    %39 = arith.addf %34, %38 : vector<2x32xf32>
    %40 = math.tanh %39 : vector<2x32xf32>
    %41 = arith.subf %5, %40 : vector<2x32xf32>
    %42 = arith.mulf %33, %41 : vector<2x32xf32>
    %43 = arith.addf %40, %42 : vector<2x32xf32>
    %c1_i32 = arith.constant 1 : i32
    %44 = arith.index_cast %c1_i32 : i32 to index
    %c0_19 = arith.constant 0 : index
    %c0_20 = arith.constant 0 : index
    %45 = vector.load %arg1[%44, %c0_19, %c0_20] : memref<8x2x6xf32, #tpu.memory_space<vmem>>, vector<1x2x6xf32>
    %46 = vector.shape_cast %45 : vector<1x2x6xf32> to vector<2x6xf32>
    %cst_21 = arith.constant dense<0.000000e+00> : vector<2x96xf32>
    %47 = tpu.matmul %46, %0, %cst_21 {dimension_numbers = #tpu.dot_dimension_numbers<[1], [0], [0], [1], [0, 0, 1, 1], [], []>} : vector<2x6xf32>, vector<6x96xf32>, vector<2x96xf32> -> vector<2x96xf32>
    %48 = arith.index_cast %c1_i32 : i32 to index
    %c0_22 = arith.constant 0 : index
    %c0_23 = arith.constant 0 : index
    %49 = vector.load %arg2[%48, %c0_22, %c0_23] : memref<8x2x4xf32, #tpu.memory_space<vmem>>, vector<1x2x4xf32>
    %50 = vector.shape_cast %49 : vector<1x2x4xf32> to vector<2x4xf32>
    %cst_24 = arith.constant dense<0.000000e+00> : vector<2x96xf32>
    %51 = tpu.matmul %50, %1, %cst_24 {dimension_numbers = #tpu.dot_dimension_numbers<[1], [0], [0], [1], [0, 0, 1, 1], [], []>} : vector<2x4xf32>, vector<4x96xf32>, vector<2x96xf32> -> vector<2x96xf32>
    %52 = arith.addf %47, %51 : vector<2x96xf32>
    %53 = vector.broadcast %3 : vector<1x96xf32> to vector<2x96xf32>
    %54 = arith.addf %52, %53 : vector<2x96xf32>
    %cst_25 = arith.constant dense<0.000000e+00> : vector<2x96xf32>
    %55 = tpu.matmul %43, %2, %cst_25 {dimension_numbers = #tpu.dot_dimension_numbers<[1], [0], [0], [1], [0, 0, 1, 1], [], []>} : vector<2x32xf32>, vector<32x96xf32>, vector<2x96xf32> -> vector<2x96xf32>
    %56 = vector.extract_strided_slice %54 {offsets = [0, 0], sizes = [2, 32], strides = [1, 1]} : vector<2x96xf32> to vector<2x32xf32>
    %57 = vector.extract_strided_slice %55 {offsets = [0, 0], sizes = [2, 32], strides = [1, 1]} : vector<2x96xf32> to vector<2x32xf32>
    %58 = arith.addf %56, %57 : vector<2x32xf32>
    %59 = arith.negf %58 : vector<2x32xf32>
    %60 = math.exp %59 : vector<2x32xf32>
    %cst_26 = arith.constant 1.000000e+00 : f32
    %61 = vector.broadcast %cst_26 : f32 to vector<2x32xf32>
    %62 = arith.addf %61, %60 : vector<2x32xf32>
    %63 = arith.divf %61, %62 : vector<2x32xf32>
    %64 = vector.extract_strided_slice %54 {offsets = [0, 32], sizes = [2, 32], strides = [1, 1]} : vector<2x96xf32> to vector<2x32xf32>
    %65 = vector.extract_strided_slice %55 {offsets = [0, 32], sizes = [2, 32], strides = [1, 1]} : vector<2x96xf32> to vector<2x32xf32>
    %66 = arith.addf %64, %65 : vector<2x32xf32>
    %67 = arith.negf %66 : vector<2x32xf32>
    %68 = math.exp %67 : vector<2x32xf32>
    %cst_27 = arith.constant 1.000000e+00 : f32
    %69 = vector.broadcast %cst_27 : f32 to vector<2x32xf32>
    %70 = arith.addf %69, %68 : vector<2x32xf32>
    %71 = arith.divf %69, %70 : vector<2x32xf32>
    %72 = vector.extract_strided_slice %54 {offsets = [0, 64], sizes = [2, 32], strides = [1, 1]} : vector<2x96xf32> to vector<2x32xf32>
    %73 = vector.extract_strided_slice %55 {offsets = [0, 64], sizes = [2, 32], strides = [1, 1]} : vector<2x96xf32> to vector<2x32xf32>
    %74 = vector.broadcast %4 : vector<1x32xf32> to vector<2x32xf32>
    %75 = arith.addf %73, %74 : vector<2x32xf32>
    %76 = arith.mulf %63, %75 : vector<2x32xf32>
    %77 = arith.addf %72, %76 : vector<2x32xf32>
    %78 = math.tanh %77 : vector<2x32xf32>
    %79 = arith.subf %43, %78 : vector<2x32xf32>
    %80 = arith.mulf %71, %79 : vector<2x32xf32>
    %81 = arith.addf %78, %80 : vector<2x32xf32>
    %c2_i32 = arith.constant 2 : i32
    %82 = arith.index_cast %c2_i32 : i32 to index
    %c0_28 = arith.constant 0 : index
    %c0_29 = arith.constant 0 : index
    %83 = vector.load %arg1[%82, %c0_28, %c0_29] : memref<8x2x6xf32, #tpu.memory_space<vmem>>, vector<1x2x6xf32>
    %84 = vector.shape_cast %83 : vector<1x2x6xf32> to vector<2x6xf32>
    %cst_30 = arith.constant dense<0.000000e+00> : vector<2x96xf32>
    %85 = tpu.matmul %84, %0, %cst_30 {dimension_numbers = #tpu.dot_dimension_numbers<[1], [0], [0], [1], [0, 0, 1, 1], [], []>} : vector<2x6xf32>, vector<6x96xf32>, vector<2x96xf32> -> vector<2x96xf32>
    %86 = arith.index_cast %c2_i32 : i32 to index
    %c0_31 = arith.constant 0 : index
    %c0_32 = arith.constant 0 : index
    %87 = vector.load %arg2[%86, %c0_31, %c0_32] : memref<8x2x4xf32, #tpu.memory_space<vmem>>, vector<1x2x4xf32>
    %88 = vector.shape_cast %87 : vector<1x2x4xf32> to vector<2x4xf32>
    %cst_33 = arith.constant dense<0.000000e+00> : vector<2x96xf32>
    %89 = tpu.matmul %88, %1, %cst_33 {dimension_numbers = #tpu.dot_dimension_numbers<[1], [0], [0], [1], [0, 0, 1, 1], [], []>} : vector<2x4xf32>, vector<4x96xf32>, vector<2x96xf32> -> vector<2x96xf32>
    %90 = arith.addf %85, %89 : vector<2x96xf32>
    %91 = vector.broadcast %3 : vector<1x96xf32> to vector<2x96xf32>
    %92 = arith.addf %90, %91 : vector<2x96xf32>
    %cst_34 = arith.constant dense<0.000000e+00> : vector<2x96xf32>
    %93 = tpu.matmul %81, %2, %cst_34 {dimension_numbers = #tpu.dot_dimension_numbers<[1], [0], [0], [1], [0, 0, 1, 1], [], []>} : vector<2x32xf32>, vector<32x96xf32>, vector<2x96xf32> -> vector<2x96xf32>
    %94 = vector.extract_strided_slice %92 {offsets = [0, 0], sizes = [2, 32], strides = [1, 1]} : vector<2x96xf32> to vector<2x32xf32>
    %95 = vector.extract_strided_slice %93 {offsets = [0, 0], sizes = [2, 32], strides = [1, 1]} : vector<2x96xf32> to vector<2x32xf32>
    %96 = arith.addf %94, %95 : vector<2x32xf32>
    %97 = arith.negf %96 : vector<2x32xf32>
    %98 = math.exp %97 : vector<2x32xf32>
    %cst_35 = arith.constant 1.000000e+00 : f32
    %99 = vector.broadcast %cst_35 : f32 to vector<2x32xf32>
    %100 = arith.addf %99, %98 : vector<2x32xf32>
    %101 = arith.divf %99, %100 : vector<2x32xf32>
    %102 = vector.extract_strided_slice %92 {offsets = [0, 32], sizes = [2, 32], strides = [1, 1]} : vector<2x96xf32> to vector<2x32xf32>
    %103 = vector.extract_strided_slice %93 {offsets = [0, 32], sizes = [2, 32], strides = [1, 1]} : vector<2x96xf32> to vector<2x32xf32>
    %104 = arith.addf %102, %103 : vector<2x32xf32>
    %105 = arith.negf %104 : vector<2x32xf32>
    %106 = math.exp %105 : vector<2x32xf32>
    %cst_36 = arith.constant 1.000000e+00 : f32
    %107 = vector.broadcast %cst_36 : f32 to vector<2x32xf32>
    %108 = arith.addf %107, %106 : vector<2x32xf32>
    %109 = arith.divf %107, %108 : vector<2x32xf32>
    %110 = vector.extract_strided_slice %92 {offsets = [0, 64], sizes = [2, 32], strides = [1, 1]} : vector<2x96xf32> to vector<2x32xf32>
    %111 = vector.extract_strided_slice %93 {offsets = [0, 64], sizes = [2, 32], strides = [1, 1]} : vector<2x96xf32> to vector<2x32xf32>
    %112 = vector.broadcast %4 : vector<1x32xf32> to vector<2x32xf32>
    %113 = arith.addf %111, %112 : vector<2x32xf32>
    %114 = arith.mulf %101, %113 : vector<2x32xf32>
    %115 = arith.addf %110, %114 : vector<2x32xf32>
    %116 = math.tanh %115 : vector<2x32xf32>
    %117 = arith.subf %81, %116 : vector<2x32xf32>
    %118 = arith.mulf %109, %117 : vector<2x32xf32>
    %119 = arith.addf %116, %118 : vector<2x32xf32>
    %c3_i32 = arith.constant 3 : i32
    %120 = arith.index_cast %c3_i32 : i32 to index
    %c0_37 = arith.constant 0 : index
    %c0_38 = arith.constant 0 : index
    %121 = vector.load %arg1[%120, %c0_37, %c0_38] : memref<8x2x6xf32, #tpu.memory_space<vmem>>, vector<1x2x6xf32>
    %122 = vector.shape_cast %121 : vector<1x2x6xf32> to vector<2x6xf32>
    %cst_39 = arith.constant dense<0.000000e+00> : vector<2x96xf32>
    %123 = tpu.matmul %122, %0, %cst_39 {dimension_numbers = #tpu.dot_dimension_numbers<[1], [0], [0], [1], [0, 0, 1, 1], [], []>} : vector<2x6xf32>, vector<6x96xf32>, vector<2x96xf32> -> vector<2x96xf32>
    %124 = arith.index_cast %c3_i32 : i32 to index
    %c0_40 = arith.constant 0 : index
    %c0_41 = arith.constant 0 : index
    %125 = vector.load %arg2[%124, %c0_40, %c0_41] : memref<8x2x4xf32, #tpu.memory_space<vmem>>, vector<1x2x4xf32>
    %126 = vector.shape_cast %125 : vector<1x2x4xf32> to vector<2x4xf32>
    %cst_42 = arith.constant dense<0.000000e+00> : vector<2x96xf32>
    %127 = tpu.matmul %126, %1, %cst_42 {dimension_numbers = #tpu.dot_dimension_numbers<[1], [0], [0], [1], [0, 0, 1, 1], [], []>} : vector<2x4xf32>, vector<4x96xf32>, vector<2x96xf32> -> vector<2x96xf32>
    %128 = arith.addf %123, %127 : vector<2x96xf32>
    %129 = vector.broadcast %3 : vector<1x96xf32> to vector<2x96xf32>
    %130 = arith.addf %128, %129 : vector<2x96xf32>
    %cst_43 = arith.constant dense<0.000000e+00> : vector<2x96xf32>
    %131 = tpu.matmul %119, %2, %cst_43 {dimension_numbers = #tpu.dot_dimension_numbers<[1], [0], [0], [1], [0, 0, 1, 1], [], []>} : vector<2x32xf32>, vector<32x96xf32>, vector<2x96xf32> -> vector<2x96xf32>
    %132 = vector.extract_strided_slice %130 {offsets = [0, 0], sizes = [2, 32], strides = [1, 1]} : vector<2x96xf32> to vector<2x32xf32>
    %133 = vector.extract_strided_slice %131 {offsets = [0, 0], sizes = [2, 32], strides = [1, 1]} : vector<2x96xf32> to vector<2x32xf32>
    %134 = arith.addf %132, %133 : vector<2x32xf32>
    %135 = arith.negf %134 : vector<2x32xf32>
    %136 = math.exp %135 : vector<2x32xf32>
    %cst_44 = arith.constant 1.000000e+00 : f32
    %137 = vector.broadcast %cst_44 : f32 to vector<2x32xf32>
    %138 = arith.addf %137, %136 : vector<2x32xf32>
    %139 = arith.divf %137, %138 : vector<2x32xf32>
    %140 = vector.extract_strided_slice %130 {offsets = [0, 32], sizes = [2, 32], strides = [1, 1]} : vector<2x96xf32> to vector<2x32xf32>
    %141 = vector.extract_strided_slice %131 {offsets = [0, 32], sizes = [2, 32], strides = [1, 1]} : vector<2x96xf32> to vector<2x32xf32>
    %142 = arith.addf %140, %141 : vector<2x32xf32>
    %143 = arith.negf %142 : vector<2x32xf32>
    %144 = math.exp %143 : vector<2x32xf32>
    %cst_45 = arith.constant 1.000000e+00 : f32
    %145 = vector.broadcast %cst_45 : f32 to vector<2x32xf32>
    %146 = arith.addf %145, %144 : vector<2x32xf32>
    %147 = arith.divf %145, %146 : vector<2x32xf32>
    %148 = vector.extract_strided_slice %130 {offsets = [0, 64], sizes = [2, 32], strides = [1, 1]} : vector<2x96xf32> to vector<2x32xf32>
    %149 = vector.extract_strided_slice %131 {offsets = [0, 64], sizes = [2, 32], strides = [1, 1]} : vector<2x96xf32> to vector<2x32xf32>
    %150 = vector.broadcast %4 : vector<1x32xf32> to vector<2x32xf32>
    %151 = arith.addf %149, %150 : vector<2x32xf32>
    %152 = arith.mulf %139, %151 : vector<2x32xf32>
    %153 = arith.addf %148, %152 : vector<2x32xf32>
    %154 = math.tanh %153 : vector<2x32xf32>
    %155 = arith.subf %119, %154 : vector<2x32xf32>
    %156 = arith.mulf %147, %155 : vector<2x32xf32>
    %157 = arith.addf %154, %156 : vector<2x32xf32>
    %c4_i32 = arith.constant 4 : i32
    %158 = arith.index_cast %c4_i32 : i32 to index
    %c0_46 = arith.constant 0 : index
    %c0_47 = arith.constant 0 : index
    %159 = vector.load %arg1[%158, %c0_46, %c0_47] : memref<8x2x6xf32, #tpu.memory_space<vmem>>, vector<1x2x6xf32>
    %160 = vector.shape_cast %159 : vector<1x2x6xf32> to vector<2x6xf32>
    %cst_48 = arith.constant dense<0.000000e+00> : vector<2x96xf32>
    %161 = tpu.matmul %160, %0, %cst_48 {dimension_numbers = #tpu.dot_dimension_numbers<[1], [0], [0], [1], [0, 0, 1, 1], [], []>} : vector<2x6xf32>, vector<6x96xf32>, vector<2x96xf32> -> vector<2x96xf32>
    %162 = arith.index_cast %c4_i32 : i32 to index
    %c0_49 = arith.constant 0 : index
    %c0_50 = arith.constant 0 : index
    %163 = vector.load %arg2[%162, %c0_49, %c0_50] : memref<8x2x4xf32, #tpu.memory_space<vmem>>, vector<1x2x4xf32>
    %164 = vector.shape_cast %163 : vector<1x2x4xf32> to vector<2x4xf32>
    %cst_51 = arith.constant dense<0.000000e+00> : vector<2x96xf32>
    %165 = tpu.matmul %164, %1, %cst_51 {dimension_numbers = #tpu.dot_dimension_numbers<[1], [0], [0], [1], [0, 0, 1, 1], [], []>} : vector<2x4xf32>, vector<4x96xf32>, vector<2x96xf32> -> vector<2x96xf32>
    %166 = arith.addf %161, %165 : vector<2x96xf32>
    %167 = vector.broadcast %3 : vector<1x96xf32> to vector<2x96xf32>
    %168 = arith.addf %166, %167 : vector<2x96xf32>
    %cst_52 = arith.constant dense<0.000000e+00> : vector<2x96xf32>
    %169 = tpu.matmul %157, %2, %cst_52 {dimension_numbers = #tpu.dot_dimension_numbers<[1], [0], [0], [1], [0, 0, 1, 1], [], []>} : vector<2x32xf32>, vector<32x96xf32>, vector<2x96xf32> -> vector<2x96xf32>
    %170 = vector.extract_strided_slice %168 {offsets = [0, 0], sizes = [2, 32], strides = [1, 1]} : vector<2x96xf32> to vector<2x32xf32>
    %171 = vector.extract_strided_slice %169 {offsets = [0, 0], sizes = [2, 32], strides = [1, 1]} : vector<2x96xf32> to vector<2x32xf32>
    %172 = arith.addf %170, %171 : vector<2x32xf32>
    %173 = arith.negf %172 : vector<2x32xf32>
    %174 = math.exp %173 : vector<2x32xf32>
    %cst_53 = arith.constant 1.000000e+00 : f32
    %175 = vector.broadcast %cst_53 : f32 to vector<2x32xf32>
    %176 = arith.addf %175, %174 : vector<2x32xf32>
    %177 = arith.divf %175, %176 : vector<2x32xf32>
    %178 = vector.extract_strided_slice %168 {offsets = [0, 32], sizes = [2, 32], strides = [1, 1]} : vector<2x96xf32> to vector<2x32xf32>
    %179 = vector.extract_strided_slice %169 {offsets = [0, 32], sizes = [2, 32], strides = [1, 1]} : vector<2x96xf32> to vector<2x32xf32>
    %180 = arith.addf %178, %179 : vector<2x32xf32>
    %181 = arith.negf %180 : vector<2x32xf32>
    %182 = math.exp %181 : vector<2x32xf32>
    %cst_54 = arith.constant 1.000000e+00 : f32
    %183 = vector.broadcast %cst_54 : f32 to vector<2x32xf32>
    %184 = arith.addf %183, %182 : vector<2x32xf32>
    %185 = arith.divf %183, %184 : vector<2x32xf32>
    %186 = vector.extract_strided_slice %168 {offsets = [0, 64], sizes = [2, 32], strides = [1, 1]} : vector<2x96xf32> to vector<2x32xf32>
    %187 = vector.extract_strided_slice %169 {offsets = [0, 64], sizes = [2, 32], strides = [1, 1]} : vector<2x96xf32> to vector<2x32xf32>
    %188 = vector.broadcast %4 : vector<1x32xf32> to vector<2x32xf32>
    %189 = arith.addf %187, %188 : vector<2x32xf32>
    %190 = arith.mulf %177, %189 : vector<2x32xf32>
    %191 = arith.addf %186, %190 : vector<2x32xf32>
    %192 = math.tanh %191 : vector<2x32xf32>
    %193 = arith.subf %157, %192 : vector<2x32xf32>
    %194 = arith.mulf %185, %193 : vector<2x32xf32>
    %195 = arith.addf %192, %194 : vector<2x32xf32>
    %c5_i32 = arith.constant 5 : i32
    %196 = arith.index_cast %c5_i32 : i32 to index
    %c0_55 = arith.constant 0 : index
    %c0_56 = arith.constant 0 : index
    %197 = vector.load %arg1[%196, %c0_55, %c0_56] : memref<8x2x6xf32, #tpu.memory_space<vmem>>, vector<1x2x6xf32>
    %198 = vector.shape_cast %197 : vector<1x2x6xf32> to vector<2x6xf32>
    %cst_57 = arith.constant dense<0.000000e+00> : vector<2x96xf32>
    %199 = tpu.matmul %198, %0, %cst_57 {dimension_numbers = #tpu.dot_dimension_numbers<[1], [0], [0], [1], [0, 0, 1, 1], [], []>} : vector<2x6xf32>, vector<6x96xf32>, vector<2x96xf32> -> vector<2x96xf32>
    %200 = arith.index_cast %c5_i32 : i32 to index
    %c0_58 = arith.constant 0 : index
    %c0_59 = arith.constant 0 : index
    %201 = vector.load %arg2[%200, %c0_58, %c0_59] : memref<8x2x4xf32, #tpu.memory_space<vmem>>, vector<1x2x4xf32>
    %202 = vector.shape_cast %201 : vector<1x2x4xf32> to vector<2x4xf32>
    %cst_60 = arith.constant dense<0.000000e+00> : vector<2x96xf32>
    %203 = tpu.matmul %202, %1, %cst_60 {dimension_numbers = #tpu.dot_dimension_numbers<[1], [0], [0], [1], [0, 0, 1, 1], [], []>} : vector<2x4xf32>, vector<4x96xf32>, vector<2x96xf32> -> vector<2x96xf32>
    %204 = arith.addf %199, %203 : vector<2x96xf32>
    %205 = vector.broadcast %3 : vector<1x96xf32> to vector<2x96xf32>
    %206 = arith.addf %204, %205 : vector<2x96xf32>
    %cst_61 = arith.constant dense<0.000000e+00> : vector<2x96xf32>
    %207 = tpu.matmul %195, %2, %cst_61 {dimension_numbers = #tpu.dot_dimension_numbers<[1], [0], [0], [1], [0, 0, 1, 1], [], []>} : vector<2x32xf32>, vector<32x96xf32>, vector<2x96xf32> -> vector<2x96xf32>
    %208 = vector.extract_strided_slice %206 {offsets = [0, 0], sizes = [2, 32], strides = [1, 1]} : vector<2x96xf32> to vector<2x32xf32>
    %209 = vector.extract_strided_slice %207 {offsets = [0, 0], sizes = [2, 32], strides = [1, 1]} : vector<2x96xf32> to vector<2x32xf32>
    %210 = arith.addf %208, %209 : vector<2x32xf32>
    %211 = arith.negf %210 : vector<2x32xf32>
    %212 = math.exp %211 : vector<2x32xf32>
    %cst_62 = arith.constant 1.000000e+00 : f32
    %213 = vector.broadcast %cst_62 : f32 to vector<2x32xf32>
    %214 = arith.addf %213, %212 : vector<2x32xf32>
    %215 = arith.divf %213, %214 : vector<2x32xf32>
    %216 = vector.extract_strided_slice %206 {offsets = [0, 32], sizes = [2, 32], strides = [1, 1]} : vector<2x96xf32> to vector<2x32xf32>
    %217 = vector.extract_strided_slice %207 {offsets = [0, 32], sizes = [2, 32], strides = [1, 1]} : vector<2x96xf32> to vector<2x32xf32>
    %218 = arith.addf %216, %217 : vector<2x32xf32>
    %219 = arith.negf %218 : vector<2x32xf32>
    %220 = math.exp %219 : vector<2x32xf32>
    %cst_63 = arith.constant 1.000000e+00 : f32
    %221 = vector.broadcast %cst_63 : f32 to vector<2x32xf32>
    %222 = arith.addf %221, %220 : vector<2x32xf32>
    %223 = arith.divf %221, %222 : vector<2x32xf32>
    %224 = vector.extract_strided_slice %206 {offsets = [0, 64], sizes = [2, 32], strides = [1, 1]} : vector<2x96xf32> to vector<2x32xf32>
    %225 = vector.extract_strided_slice %207 {offsets = [0, 64], sizes = [2, 32], strides = [1, 1]} : vector<2x96xf32> to vector<2x32xf32>
    %226 = vector.broadcast %4 : vector<1x32xf32> to vector<2x32xf32>
    %227 = arith.addf %225, %226 : vector<2x32xf32>
    %228 = arith.mulf %215, %227 : vector<2x32xf32>
    %229 = arith.addf %224, %228 : vector<2x32xf32>
    %230 = math.tanh %229 : vector<2x32xf32>
    %231 = arith.subf %195, %230 : vector<2x32xf32>
    %232 = arith.mulf %223, %231 : vector<2x32xf32>
    %233 = arith.addf %230, %232 : vector<2x32xf32>
    %c6_i32 = arith.constant 6 : i32
    %234 = arith.index_cast %c6_i32 : i32 to index
    %c0_64 = arith.constant 0 : index
    %c0_65 = arith.constant 0 : index
    %235 = vector.load %arg1[%234, %c0_64, %c0_65] : memref<8x2x6xf32, #tpu.memory_space<vmem>>, vector<1x2x6xf32>
    %236 = vector.shape_cast %235 : vector<1x2x6xf32> to vector<2x6xf32>
    %cst_66 = arith.constant dense<0.000000e+00> : vector<2x96xf32>
    %237 = tpu.matmul %236, %0, %cst_66 {dimension_numbers = #tpu.dot_dimension_numbers<[1], [0], [0], [1], [0, 0, 1, 1], [], []>} : vector<2x6xf32>, vector<6x96xf32>, vector<2x96xf32> -> vector<2x96xf32>
    %238 = arith.index_cast %c6_i32 : i32 to index
    %c0_67 = arith.constant 0 : index
    %c0_68 = arith.constant 0 : index
    %239 = vector.load %arg2[%238, %c0_67, %c0_68] : memref<8x2x4xf32, #tpu.memory_space<vmem>>, vector<1x2x4xf32>
    %240 = vector.shape_cast %239 : vector<1x2x4xf32> to vector<2x4xf32>
    %cst_69 = arith.constant dense<0.000000e+00> : vector<2x96xf32>
    %241 = tpu.matmul %240, %1, %cst_69 {dimension_numbers = #tpu.dot_dimension_numbers<[1], [0], [0], [1], [0, 0, 1, 1], [], []>} : vector<2x4xf32>, vector<4x96xf32>, vector<2x96xf32> -> vector<2x96xf32>
    %242 = arith.addf %237, %241 : vector<2x96xf32>
    %243 = vector.broadcast %3 : vector<1x96xf32> to vector<2x96xf32>
    %244 = arith.addf %242, %243 : vector<2x96xf32>
    %cst_70 = arith.constant dense<0.000000e+00> : vector<2x96xf32>
    %245 = tpu.matmul %233, %2, %cst_70 {dimension_numbers = #tpu.dot_dimension_numbers<[1], [0], [0], [1], [0, 0, 1, 1], [], []>} : vector<2x32xf32>, vector<32x96xf32>, vector<2x96xf32> -> vector<2x96xf32>
    %246 = vector.extract_strided_slice %244 {offsets = [0, 0], sizes = [2, 32], strides = [1, 1]} : vector<2x96xf32> to vector<2x32xf32>
    %247 = vector.extract_strided_slice %245 {offsets = [0, 0], sizes = [2, 32], strides = [1, 1]} : vector<2x96xf32> to vector<2x32xf32>
    %248 = arith.addf %246, %247 : vector<2x32xf32>
    %249 = arith.negf %248 : vector<2x32xf32>
    %250 = math.exp %249 : vector<2x32xf32>
    %cst_71 = arith.constant 1.000000e+00 : f32
    %251 = vector.broadcast %cst_71 : f32 to vector<2x32xf32>
    %252 = arith.addf %251, %250 : vector<2x32xf32>
    %253 = arith.divf %251, %252 : vector<2x32xf32>
    %254 = vector.extract_strided_slice %244 {offsets = [0, 32], sizes = [2, 32], strides = [1, 1]} : vector<2x96xf32> to vector<2x32xf32>
    %255 = vector.extract_strided_slice %245 {offsets = [0, 32], sizes = [2, 32], strides = [1, 1]} : vector<2x96xf32> to vector<2x32xf32>
    %256 = arith.addf %254, %255 : vector<2x32xf32>
    %257 = arith.negf %256 : vector<2x32xf32>
    %258 = math.exp %257 : vector<2x32xf32>
    %cst_72 = arith.constant 1.000000e+00 : f32
    %259 = vector.broadcast %cst_72 : f32 to vector<2x32xf32>
    %260 = arith.addf %259, %258 : vector<2x32xf32>
    %261 = arith.divf %259, %260 : vector<2x32xf32>
    %262 = vector.extract_strided_slice %244 {offsets = [0, 64], sizes = [2, 32], strides = [1, 1]} : vector<2x96xf32> to vector<2x32xf32>
    %263 = vector.extract_strided_slice %245 {offsets = [0, 64], sizes = [2, 32], strides = [1, 1]} : vector<2x96xf32> to vector<2x32xf32>
    %264 = vector.broadcast %4 : vector<1x32xf32> to vector<2x32xf32>
    %265 = arith.addf %263, %264 : vector<2x32xf32>
    %266 = arith.mulf %253, %265 : vector<2x32xf32>
    %267 = arith.addf %262, %266 : vector<2x32xf32>
    %268 = math.tanh %267 : vector<2x32xf32>
    %269 = arith.subf %233, %268 : vector<2x32xf32>
    %270 = arith.mulf %261, %269 : vector<2x32xf32>
    %271 = arith.addf %268, %270 : vector<2x32xf32>
    %c7_i32 = arith.constant 7 : i32
    %272 = arith.index_cast %c7_i32 : i32 to index
    %c0_73 = arith.constant 0 : index
    %c0_74 = arith.constant 0 : index
    %273 = vector.load %arg1[%272, %c0_73, %c0_74] : memref<8x2x6xf32, #tpu.memory_space<vmem>>, vector<1x2x6xf32>
    %274 = vector.shape_cast %273 : vector<1x2x6xf32> to vector<2x6xf32>
    %cst_75 = arith.constant dense<0.000000e+00> : vector<2x96xf32>
    %275 = tpu.matmul %274, %0, %cst_75 {dimension_numbers = #tpu.dot_dimension_numbers<[1], [0], [0], [1], [0, 0, 1, 1], [], []>} : vector<2x6xf32>, vector<6x96xf32>, vector<2x96xf32> -> vector<2x96xf32>
    %276 = arith.index_cast %c7_i32 : i32 to index
    %c0_76 = arith.constant 0 : index
    %c0_77 = arith.constant 0 : index
    %277 = vector.load %arg2[%276, %c0_76, %c0_77] : memref<8x2x4xf32, #tpu.memory_space<vmem>>, vector<1x2x4xf32>
    %278 = vector.shape_cast %277 : vector<1x2x4xf32> to vector<2x4xf32>
    %cst_78 = arith.constant dense<0.000000e+00> : vector<2x96xf32>
    %279 = tpu.matmul %278, %1, %cst_78 {dimension_numbers = #tpu.dot_dimension_numbers<[1], [0], [0], [1], [0, 0, 1, 1], [], []>} : vector<2x4xf32>, vector<4x96xf32>, vector<2x96xf32> -> vector<2x96xf32>
    %280 = arith.addf %275, %279 : vector<2x96xf32>
    %281 = vector.broadcast %3 : vector<1x96xf32> to vector<2x96xf32>
    %282 = arith.addf %280, %281 : vector<2x96xf32>
    %cst_79 = arith.constant dense<0.000000e+00> : vector<2x96xf32>
    %283 = tpu.matmul %271, %2, %cst_79 {dimension_numbers = #tpu.dot_dimension_numbers<[1], [0], [0], [1], [0, 0, 1, 1], [], []>} : vector<2x32xf32>, vector<32x96xf32>, vector<2x96xf32> -> vector<2x96xf32>
    %284 = vector.extract_strided_slice %282 {offsets = [0, 0], sizes = [2, 32], strides = [1, 1]} : vector<2x96xf32> to vector<2x32xf32>
    %285 = vector.extract_strided_slice %283 {offsets = [0, 0], sizes = [2, 32], strides = [1, 1]} : vector<2x96xf32> to vector<2x32xf32>
    %286 = arith.addf %284, %285 : vector<2x32xf32>
    %287 = arith.negf %286 : vector<2x32xf32>
    %288 = math.exp %287 : vector<2x32xf32>
    %cst_80 = arith.constant 1.000000e+00 : f32
    %289 = vector.broadcast %cst_80 : f32 to vector<2x32xf32>
    %290 = arith.addf %289, %288 : vector<2x32xf32>
    %291 = arith.divf %289, %290 : vector<2x32xf32>
    %292 = vector.extract_strided_slice %282 {offsets = [0, 32], sizes = [2, 32], strides = [1, 1]} : vector<2x96xf32> to vector<2x32xf32>
    %293 = vector.extract_strided_slice %283 {offsets = [0, 32], sizes = [2, 32], strides = [1, 1]} : vector<2x96xf32> to vector<2x32xf32>
    %294 = arith.addf %292, %293 : vector<2x32xf32>
    %295 = arith.negf %294 : vector<2x32xf32>
    %296 = math.exp %295 : vector<2x32xf32>
    %cst_81 = arith.constant 1.000000e+00 : f32
    %297 = vector.broadcast %cst_81 : f32 to vector<2x32xf32>
    %298 = arith.addf %297, %296 : vector<2x32xf32>
    %299 = arith.divf %297, %298 : vector<2x32xf32>
    %300 = vector.extract_strided_slice %282 {offsets = [0, 64], sizes = [2, 32], strides = [1, 1]} : vector<2x96xf32> to vector<2x32xf32>
    %301 = vector.extract_strided_slice %283 {offsets = [0, 64], sizes = [2, 32], strides = [1, 1]} : vector<2x96xf32> to vector<2x32xf32>
    %302 = vector.broadcast %4 : vector<1x32xf32> to vector<2x32xf32>
    %303 = arith.addf %301, %302 : vector<2x32xf32>
    %304 = arith.mulf %291, %303 : vector<2x32xf32>
    %305 = arith.addf %300, %304 : vector<2x32xf32>
    %306 = math.tanh %305 : vector<2x32xf32>
    %307 = arith.subf %271, %306 : vector<2x32xf32>
    %308 = arith.mulf %299, %307 : vector<2x32xf32>
    %309 = arith.addf %306, %308 : vector<2x32xf32>
    %c8_i32 = arith.constant 8 : i32
    %c0_82 = arith.constant 0 : index
    %c0_83 = arith.constant 0 : index
    %310 = vector.load %arg13[%c0_82, %c0_83] : memref<2x32xf32, #tpu.memory_space<vmem>>, vector<2x32xf32>
    tpu.vector_store %arg13[%c0_82, %c0_83], %309 {strides = array<i32>} : memref<2x32xf32, #tpu.memory_space<vmem>>, vector<2x32xf32>,
    %311 = arith.mulf %309, %309 : vector<2x32xf32>
    %cst_84 = arith.constant dense<0.000000e+00> : vector<2xf32>
    %312 = vector.multi_reduction <add>, %311, %cst_84 [1] : vector<2x32xf32> to vector<2xf32>
    %313 = vector.shape_cast %312 : vector<2xf32> to vector<2x1xf32>
    %314 = math.rsqrt %313 : vector<2x1xf32>
    %315 = vector.broadcast %314 : vector<2x1xf32> to vector<2x32xf32>
    %316 = arith.mulf %309, %315 : vector<2x32xf32>
    %c0_85 = arith.constant 0 : index
    %c0_86 = arith.constant 0 : index
    %317 = vector.load %arg9[%c0_85, %c0_86] : memref<32x40xf32, #tpu.memory_space<vmem>>, vector<32x40xf32>
    %cst_87 = arith.constant dense<0.000000e+00> : vector<2x40xf32>
    %318 = tpu.matmul %316, %317, %cst_87 {dimension_numbers = #tpu.dot_dimension_numbers<[1], [0], [0], [1], [0, 0, 1, 1], [], []>} : vector<2x32xf32>, vector<32x40xf32>, vector<2x40xf32> -> vector<2x40xf32>
    %c0_88 = arith.constant 0 : index
    %c0_89 = arith.constant 0 : index
    %319 = vector.load %arg10[%c0_88, %c0_89] : memref<1x40xf32, #tpu.memory_space<vmem>>, vector<1x40xf32>
    %320 = vector.broadcast %319 : vector<1x40xf32> to vector<2x40xf32>
    %321 = arith.addf %318, %320 : vector<2x40xf32>
    %cst_90 = arith.constant 0.000000e+00 : f32
    %322 = vector.broadcast %cst_90 : f32 to vector<2x40xf32>
    %323 = arith.maximumf %321, %322 : vector<2x40xf32>
    %c0_91 = arith.constant 0 : index
    %c0_92 = arith.constant 0 : index
    %324 = vector.load %arg11[%c0_91, %c0_92] : memref<40x4xf32, #tpu.memory_space<vmem>>, vector<40x4xf32>
    %cst_93 = arith.constant dense<0.000000e+00> : vector<2x4xf32>
    %325 = tpu.matmul %323, %324, %cst_93 {dimension_numbers = #tpu.dot_dimension_numbers<[1], [0], [0], [1], [0, 0, 1, 1], [], []>} : vector<2x40xf32>, vector<40x4xf32>, vector<2x4xf32> -> vector<2x4xf32>
    %c0_94 = arith.constant 0 : index
    %c0_95 = arith.constant 0 : index
    %326 = vector.load %arg12[%c0_94, %c0_95] : memref<1x4xf32, #tpu.memory_space<vmem>>, vector<1x4xf32>
    %327 = vector.broadcast %326 : vector<1x4xf32> to vector<2x4xf32>
    %328 = arith.addf %325, %327 : vector<2x4xf32>
    %329 = tpu.iota {dimensions = array<i32: 1>} : vector<2x4xi32>
    %c2_i32_96 = arith.constant 2 : i32
    %330 = vector.broadcast %c2_i32_96 : i32 to vector<2x4xi32>
    %331 = arith.cmpi eq, %329, %330 : vector<2x4xi32>
    %332 = math.tanh %328 : vector<2x4xf32>
    %333 = arith.select %331, %332, %328 : vector<2x4xi1>, vector<2x4xf32>
    %c0_97 = arith.constant 0 : index
    %c0_98 = arith.constant 0 : index
    %334 = vector.load %arg14[%c0_97, %c0_98] : memref<2x4xf32, #tpu.memory_space<vmem>>, vector<2x4xf32>
    tpu.vector_store %arg14[%c0_97, %c0_98], %333 {strides = array<i32>} : memref<2x4xf32, #tpu.memory_space<vmem>>, vector<2x4xf32>,
    return
  }
  func.func @transform_0(%arg0: i32) -> (i32, i32, i32) {
    %c0_i32 = arith.constant 0 : i32
    %c0_i32_0 = arith.constant 0 : i32
    %c0_i32_1 = arith.constant 0 : i32
    return %c0_i32, %arg0, %c0_i32_0 : i32, i32, i32
  }
  func.func @transform_1(%arg0: i32) -> (i32, i32, i32) {
    %c0_i32 = arith.constant 0 : i32
    %c0_i32_0 = arith.constant 0 : i32
    %c0_i32_1 = arith.constant 0 : i32
    return %c0_i32, %arg0, %c0_i32_0 : i32, i32, i32
  }
  func.func @transform_2(%arg0: i32) -> (i32, i32) {
    %c0_i32 = arith.constant 0 : i32
    %c0_i32_0 = arith.constant 0 : i32
    return %arg0, %c0_i32 : i32, i32
  }
  func.func @transform_3(%arg0: i32) -> (i32, i32) {
    %c0_i32 = arith.constant 0 : i32
    %c0_i32_0 = arith.constant 0 : i32
    %c0_i32_1 = arith.constant 0 : i32
    return %c0_i32, %c0_i32_0 : i32, i32
  }
  func.func @transform_4(%arg0: i32) -> (i32, i32) {
    %c0_i32 = arith.constant 0 : i32
    %c0_i32_0 = arith.constant 0 : i32
    %c0_i32_1 = arith.constant 0 : i32
    return %c0_i32, %c0_i32_0 : i32, i32
  }
  func.func @transform_5(%arg0: i32) -> (i32, i32) {
    %c0_i32 = arith.constant 0 : i32
    %c0_i32_0 = arith.constant 0 : i32
    %c0_i32_1 = arith.constant 0 : i32
    return %c0_i32, %c0_i32_0 : i32, i32
  }
  func.func @transform_6(%arg0: i32) -> (i32, i32) {
    %c0_i32 = arith.constant 0 : i32
    %c0_i32_0 = arith.constant 0 : i32
    %c0_i32_1 = arith.constant 0 : i32
    return %c0_i32, %c0_i32_0 : i32, i32
  }
  func.func @transform_7(%arg0: i32) -> (i32, i32) {
    %c0_i32 = arith.constant 0 : i32
    %c0_i32_0 = arith.constant 0 : i32
    %c0_i32_1 = arith.constant 0 : i32
    return %c0_i32, %c0_i32_0 : i32, i32
  }
  func.func @transform_8(%arg0: i32) -> (i32, i32) {
    %c0_i32 = arith.constant 0 : i32
    %c0_i32_0 = arith.constant 0 : i32
    %c0_i32_1 = arith.constant 0 : i32
    return %c0_i32, %c0_i32_0 : i32, i32
  }
  func.func @transform_9(%arg0: i32) -> (i32, i32) {
    %c0_i32 = arith.constant 0 : i32
    %c0_i32_0 = arith.constant 0 : i32
    %c0_i32_1 = arith.constant 0 : i32
    return %c0_i32, %c0_i32_0 : i32, i32
  }
  func.func @transform_10(%arg0: i32) -> (i32, i32) {
    %c0_i32 = arith.constant 0 : i32
    %c0_i32_0 = arith.constant 0 : i32
    %c0_i32_1 = arith.constant 0 : i32
    return %c0_i32, %c0_i32_0 : i32, i32
  }
  func.func @transform_11(%arg0: i32) -> (i32, i32) {
    %c0_i32 = arith.constant 0 : i32
    %c0_i32_0 = arith.constant 0 : i32
    %c0_i32_1 = arith.constant 0 : i32
    return %c0_i32, %c0_i32_0 : i32, i32
  }
  func.func @transform_12(%arg0: i32) -> (i32, i32) {
    %c0_i32 = arith.constant 0 : i32
    %c0_i32_0 = arith.constant 0 : i32
    return %arg0, %c0_i32 : i32, i32
  }
  func.func @transform_13(%arg0: i32) -> (i32, i32) {
    %c0_i32 = arith.constant 0 : i32
    %c0_i32_0 = arith.constant 0 : i32
    return %arg0, %c0_i32 : i32, i32
  }
}

</mosaic_0001>

<bundles_post_ra>
// kernel: f1mlp_forward.1
= control target key start
LH: loop header
LB: loop body
LE: loop exit
PB: predicated region body
PF: predicated region fallthrough
CT: control target
= control target key end

     0   :  { %vm59_vm0 = vcmask 1043456   ;;  %v2826_v1 = vmov 0.0   ;;  %vm2827_vm1 = vmmov 0   ;;  %vm55_vm2 = vcmask 31744   ;;  %s3262_s0 = inlined_call_operand.vmem [shape: f32[8,2,6], index: 0, kind: input, shape index: {}]   ;;  %s3263_s1 = inlined_call_operand.vmem [shape: f32[8,2,4], index: 1, kind: input, shape index: {}]   ;;  %s3264_s2 = inlined_call_operand.vmem [shape: f32[2,32], index: 2, kind: input, shape index: {}]   ;;  %s3265_s3 = inlined_call_operand.vmem [shape: f32[6,96], index: 3, kind: input, shape index: {}]   ;;  %s3266_s4 = inlined_call_operand.vmem [shape: f32[4,96], index: 4, kind: input, shape index: {}]   ;;  %s3267_s5 = inlined_call_operand.vmem [shape: f32[1,96], index: 5, kind: input, shape index: {}]   ;;  %s3268_s6 = inlined_call_operand.vmem [shape: f32[32,96], index: 6, kind: input, shape index: {}]   ;;  %s3269_s7 = inlined_call_operand.vmem [shape: f32[1,32], index: 7, kind: input, shape index: {}]   ;;  %s3270_s8 = inlined_call_operand.vmem [shape: f32[32,40], index: 8, kind: input, shape index: {}]   ;;  %s3271_s9 = inlined_call_operand.vmem [shape: f32[1,40], index: 9, kind: input, shape index: {}]   ;;  %s3272_s10 = inlined_call_operand.vmem [shape: f32[40,4], index: 10, kind: input, shape index: {}]   ;;  %s3273_s11 = inlined_call_operand.vmem [shape: f32[1,4], index: 11, kind: input, shape index: {}]   ;;  %s3274_s12 = inlined_call_operand.hbm [shape: f32[2,32], index: 12, kind: output, shape index: {0}]   ;;  %s3275_s13 = inlined_call_operand.vmem [shape: f32[2,4], index: 13, kind: output, shape index: {1}]  }
   0x1   :  { %v2906_v0 = vld [vmem:[%s3266_s4] sm:$0xf]  ;;  %2491 = vmatprep.subr.mxu1 %v2826_v1  ;;  %2493 = vmatprep.mubr.msk.f32.mxu1 %vm2827_vm1, %v2826_v1  ;;  %v47_v4 = vld [vmem:[%s3268_s6 + $0x8] sm:$0xff]  ;;  %vm137_vm3 = vcmask 1045504   ;;  %v2828_v5 = vmov 0.0|0.0   ;;  %v48_v8 = vld [vmem:[%s3268_s6 + $0x10] sm:$0xff] }
   0x2   :  { %v54_v2 = vld [vmem:[%s3263_s1] sm:$0x3]  ;;  %2492 = vmatpush3.msk.msra.mxu1 %vm59_vm0, %v2906_v0  ;;  %2683 = vmatprep.subr.bf16.mxu0 %v2828_v5  ;;  %v49_v9 = vld [vmem:[%s3268_s6 + $0x18] sm:$0xff]  ;;  %vm133_vm4 = vcmask 48128  }
   0x3   :  { %v46_v3 = vld [vmem:[%s3268_s6] sm:$0xff]  ;;  %2494 = vmatmul.mubr.msk.f32.vlgmr.msra.gmra.mrb[0].mxu1 %vm55_vm2, %v54_v2  ;;  %2496 = vmatprep.subr.mxu1 %v2826_v1  ;;  %v2947_v12 = vpack.c.bf16 %v49_v9, %v48_v8 }
   0x4   :  { %v2923_v6 = vpack.c.bf16 %v47_v4, %v46_v3  ;;  %v2928_v7 = vld [vmem:[%s3265_s3] sm:$0x3f] }
   0x5   :  { %v2347_v10 = vld [vmem:[%s3269_s7] ss:$0 sm:$0xff]  ;;  %2497 = vmatpush3.msk.msra.mxu1 %vm137_vm3, %v2928_v7 }
   0x6   :  { %2685 = vmatpush3.bf16.msra.mxu0 %v2923_v6  ;;  %v53_v11 = vld [vmem:[%s3262_s0] sm:$0x3] }
   0x7   :  { %19 = vsyncpa [#allocation3], 0  ;;  %2498 = vmatprep.mubr.msk.f32.mxu1 %vm2827_vm1, %v2826_v1  ;;  %2686 = vmatprep.subr.bf16.mxu0 %v2828_v5  ;;  %s2829_s6 = smov 64   ;;  %v52_v13 = vld [vmem:[%s3264_s2] sm:$0x3]  ;;  %vm218_vm5 = vcmask 261120  }
   0x8   :  { %2509 = vmatprep.mubr.msk.f32.mxu0 %vm2827_vm1, %v2826_v1  ;;  %304 = vrot.lane.b32.xlu0 %v2347_v10, %s2829_s6  ;;  %v2981_v23 = vld [vmem:[%s3267_s5] ss:$0 sm:$0xff]  ;;  %s2830_s5 = smov 32   ;;  %v2349_v37 = vld [vmem:[%s3263_s1 + $0x2] sm:$0x3]  ;;  %s2831_s30 = smov 96  }
   0x9   :  { %2499 = vmatmul.mubr.msk.f32.vlgmr.msra.gmra.mrb[2].mxu1 %vm133_vm4, %v53_v11  ;;  %2512 = vmatprep.subr.mxu1 %v2826_v1  ;;  %v2348_v38 = vld [vmem:[%s3262_s0 + $0x2] sm:$0x3]  ;;  %v2357_v2 = vld [vmem:[%s3263_s1 + $0x4] sm:$0x3]  ;;  %vm2130_vm6 = vcmask 254976   ;;  %vm2241_vm7 = vcmask 326656  }
   0xa   :  { %2688 = vmatpush3.bf16.msra.mxu0 %v2947_v12  ;;  %2513 = vmatpush3.msk.msra.mxu1 %vm59_vm0, %v2906_v0  ;;  %v2356_v3 = vld [vmem:[%s3262_s0 + $0x4] sm:$0x3]  ;;  %s2832_s28 = smov [#allocation2]  }
   0xb   :  { %2514 = vmatprep.mubr.msk.f32.mxu1 %vm2827_vm1, %v2826_v1  ;;  %2689 = vmatprep.subr.bf16.mxu0 %v2828_v5  ;;  %s2328_s29 = sshll.u32 %s2832_s28, 4  ;;  %s2329_s29 = int_to_ptr.vmem [resolvable:$true] %s2328_s29 }
   0xc   :  { %2517 = vmatprep.subr.mxu1 %v2826_v1  ;;  %s2802_s14 = scalar_lea.vmem %s2329_s29, 32  ;;  %p2807_p1 = scmp.lt.s32.totalorder %s2329_s29, %s2329_s29 }
   0xd   :  { %2510 = vmatmul.mubr.msk.f32.vlgmr.msra.gmra.mrb[0].mxu0 %vm218_vm5, %v52_v13  ;;  %2515 = vmatmul.mubr.msk.f32.vlgmr.msra.gmra.mrb[4].mxu1 %vm55_vm2, %v2349_v37  ;;  %p2803_p0 = scmp.ne.s32.totalorder %s2329_s29, %s2802_s14  ;;  %p2808_p2 = scmp.lt.s32.totalorder %s2802_s14, %s2802_s14 }
   0xe   :  { %2691 = vmatpush3.bf16.msra.mxu0 %v2923_v6  ;;  %2530 = vmatprep.mubr.msk.f32.mxu0 %vm2827_vm1, %v2826_v1 }
   0xf   :  { %2692 = vmatprep.subr.bf16.mxu0 %v2828_v5  ;;  %2518 = vmatpush3.msk.msra.mxu1 %vm137_vm3, %v2928_v7  ;;  %p2809_p3 = por %p2808_p2, %p2807_p1 }
  0x10   :  { %2519 = vmatprep.mubr.msk.f32.mxu1 %vm2827_vm1, %v2826_v1  ;;  %2533 = vmatprep.subr.mxu1 %v2826_v1 }
  0x11   :  { %2520 = vmatmul.mubr.msk.f32.vlgmr.msra.gmra.mrb[6].mxu1 %vm133_vm4, %v2348_v38  ;;  %p2810_p4 = pnand %p2809_p3, %p2803_p0 }
  0x12   :  { %2694 = vmatpush3.bf16.msra.mxu0 %v2947_v12  ;;  %2534 = vmatpush3.msk.msra.mxu1 %vm59_vm0, %v2906_v0 }
  0x13   :  { %2695 = vmatprep.subr.bf16.mxu0 %v2828_v5  ;;  %2535 = vmatprep.mubr.msk.f32.mxu1 %vm2827_vm1, %v2826_v1 }
  0x14   :  { %2538 = vmatprep.subr.mxu1 %v2826_v1 }
  0x15   :  { %2536 = vmatmul.mubr.msk.f32.vlgmr.msra.gmra.mrb[8].mxu1 %vm55_vm2, %v2357_v2 }
  0x16   :  { %2539 = vmatpush3.msk.msra.mxu1 %vm137_vm3, %v2928_v7  ;;  %2540 = vmatprep.mubr.msk.f32.mxu1 %vm2827_vm1, %v2826_v1 }
  0x17   :  { %2554 = vmatprep.subr.mxu1 %v2826_v1 }
  0x19   :  { %2541 = vmatmul.mubr.msk.f32.vlgmr.msra.gmra.mrb[10].mxu1 %vm133_vm4, %v2356_v3 }
  0x1a   :  { %2555 = vmatpush3.msk.msra.mxu1 %vm59_vm0, %v2906_v0  ;;  %2556 = vmatprep.mubr.msk.f32.mxu1 %vm2827_vm1, %v2826_v1 }
  0x1b   :  { %2559 = vmatprep.subr.mxu1 %v2826_v1 }
  0x7a   :  { %v2974_v19 = vpop.permute.xlu0 %304 }
  0xd6   :  { %v129_v14 = vpop.f32.mrb[0].mxu1 }
  0xd7   :  { %v2495_v15 = vpop.f32.mrb[1].mxu1 }
  0xdc   :  { %v207_v16 = vpop.f32.mrb[2].mxu1 }
  0xdd   :  { %v208_v17 = vadd.f32 %v207_v16, %v129_v14  ;;  %v2500_v18 = vpop.f32.mrb[3].mxu1 }
  0xdf   :  { %v217_v24 = vadd.f32 %v2981_v23, %v208_v17 }
  0xe0   :  { %v288_v20 = vpop.f32.mrb[0].mxu0  ;;  %v407_v43 = vpop.f32.mrb[4].mxu1 }
  0xe1   :  { %v307_v21 = vadd.f32 %v2974_v19, %v288_v20  ;;  %v2511_v22 = vpop.f32.mrb[1].mxu0  ;;  %v292_v25 = vadd.f32 %v288_v20, %v217_v24  ;;  %v2516_v44 = vpop.f32.mrb[5].mxu1 }
  0xe3   :  { %309 = vrot.lane.b32.xlu0 %v307_v21, %s2829_s6  ;;  %v2346_v26 = vmul.f32 -1.442695, %v292_v25 }
  0xe4   :  { %v480_v45 = vpop.f32.mrb[6].mxu1 }
  0xe5   :  { %2750 = vpow2.f32 %v2346_v26  ;;  %v481_v46 = vadd.f32 %v480_v45, %v407_v43  ;;  %v2521_v47 = vpop.f32.mrb[7].mxu1 }
  0xe7   :  { %v484_v52 = vadd.f32 %v2981_v23, %v481_v46 }
  0xe8   :  { %v663_v11 = vpop.f32.mrb[8].mxu1 }
  0xef   :  { %v2751_v27 = vpop.eup %2750 }
  0xf0   :  { %v296_v28 = vadd.f32 1.0, %v2751_v27 }
  0xf2   :  { %2752 = vrcp.f32 %v296_v28 }
  0xfc   :  { %v2753_v29 = vpop.eup %2752 }
 0x155   :  { %v310_v30 = vpop.permute.xlu0 %309 }
 0x156   :  { %v312_v31 = vmul.f32 %v2753_v29, %v310_v30 }
 0x158   :  { %314 = vrot.lane.b32.xlu1 %v312_v31, %s2829_s6 }
 0x1ca   :  { %v315_v32 = vpop.permute.xlu1 %314 }
 0x1cb   :  { %v317_v33 = vadd.f32 %v315_v32, %v217_v24 }
 0x1cd   :  { %2754 = vtanh.f32 %v317_v33 }
 0x1d7   :  { %v2755_v34 = vpop.eup %2754 }
 0x1d8   :  { %320 = vrot.lane.b32.xlu1 %v2755_v34, %s2829_s6 }
 0x24a   :  { %v321_v35 = vpop.permute.xlu1 %320 }
 0x24b   :  { %v323_v36 = vsub.f32 %v52_v13, %v321_v35  ;;  %v2537_v13 = vpop.f32.mrb[9].mxu1  ;;  %v2365_v35 = vld [vmem:[%s3263_s1 + $0x6] sm:$0x3] }
 0x24c   :  { %v736_v14 = vpop.f32.mrb[10].mxu1  ;;  %2557 = vmatmul.mubr.msk.f32.vlgmr.msra.gmra.mrb[12].mxu1 %vm55_vm2, %v2365_v35 }
 0x24d   :  { %325 = vrot.lane.b32.xlu0 %v323_v36, %s2830_s5  ;;  %v737_v15 = vadd.f32 %v736_v14, %v663_v11  ;;  %v2542_v16 = vpop.f32.mrb[11].mxu1  ;;  %2560 = vmatpush3.msk.msra.mxu1 %vm137_vm3, %v2928_v7  ;;  %v2364_v36 = vld [vmem:[%s3262_s0 + $0x6] sm:$0x3] }
 0x24e   :  { %2561 = vmatprep.mubr.msk.f32.mxu1 %vm2827_vm1, %v2826_v1  ;;  %2575 = vmatprep.subr.mxu1 %v2826_v1 }
 0x24f   :  { %v740_v22 = vadd.f32 %v2981_v23, %v737_v15 }
 0x250   :  { %2562 = vmatmul.mubr.msk.f32.vlgmr.msra.gmra.mrb[14].mxu1 %vm133_vm4, %v2364_v36 }
 0x251   :  { %2576 = vmatpush3.msk.msra.mxu1 %vm59_vm0, %v2906_v0  ;;  %2577 = vmatprep.mubr.msk.f32.mxu1 %vm2827_vm1, %v2826_v1 }
 0x252   :  { %2580 = vmatprep.subr.mxu1 %v2826_v1 }
 0x2bf   :  { %v326_v39 = vpop.permute.xlu0 %325 }
 0x2c0   :  { %v328_v40 = vmul.f32 %v2753_v29, %v326_v39 }
 0x2c2   :  { %330 = vrot.lane.b32.xlu1 %v328_v40, %s2830_s5 }
 0x334   :  { %v331_v41 = vpop.permute.xlu1 %330 }
 0x335   :  { %v333_v42 = vadd.f32 %v2755_v34, %v331_v41  ;;  %v919_v41 = vpop.f32.mrb[12].mxu1 }
 0x337   :  { %486 = vrot.lane.b32.xlu0 %v333_v42, %s2829_s6 }
 0x3a9   :  { %v487_v48 = vpop.permute.xlu0 %486 }
 0x3aa   :  { %2531 = vmatmul.mubr.msk.f32.vlgmr.msra.gmra.mrb[2].mxu0 %vm218_vm5, %v487_v48 }
 0x3ab   :  { %2697 = vmatpush3.bf16.msra.mxu0 %v2923_v6  ;;  %2551 = vmatprep.mubr.msk.f32.mxu0 %vm2827_vm1, %v2826_v1 }
 0x3ac   :  { %2698 = vmatprep.subr.bf16.mxu0 %v2828_v5 }
 0x3af   :  { %2700 = vmatpush3.bf16.msra.mxu0 %v2947_v12 }
 0x3b0   :  { %2701 = vmatprep.subr.bf16.mxu0 %v2828_v5 }
 0x47d   :  { %v556_v49 = vpop.f32.mrb[2].mxu0 }
 0x47e   :  { %v567_v50 = vadd.f32 %v556_v49, %v2974_v19  ;;  %v2532_v51 = vpop.f32.mrb[3].mxu0  ;;  %v560_v53 = vadd.f32 %v556_v49, %v484_v52 }
 0x480   :  { %569 = vrot.lane.b32.xlu1 %v567_v50, %s2829_s6  ;;  %v2355_v54 = vmul.f32 -1.442695, %v560_v53 }
 0x482   :  { %2756 = vpow2.f32 %v2355_v54 }
 0x48c   :  { %v2757_v55 = vpop.eup %2756 }
 0x48d   :  { %v564_v56 = vadd.f32 1.0, %v2757_v55 }
 0x48f   :  { %2758 = vrcp.f32 %v564_v56 }
 0x499   :  { %v2759_v57 = vpop.eup %2758 }
 0x4f2   :  { %v570_v58 = vpop.permute.xlu1 %569 }
 0x4f3   :  { %v572_v59 = vmul.f32 %v2759_v57, %v570_v58 }
 0x4f5   :  { %574 = vrot.lane.b32.xlu0 %v572_v59, %s2829_s6 }
 0x567   :  { %v575_v60 = vpop.permute.xlu0 %574 }
 0x568   :  { %v577_v61 = vadd.f32 %v575_v60, %v484_v52 }
 0x56a   :  { %2760 = vtanh.f32 %v577_v61 }
 0x574   :  { %v2761_v62 = vpop.eup %2760 }
 0x575   :  { %v579_v63 = vsub.f32 %v333_v42, %v2761_v62  ;;  %v2558_v42 = vpop.f32.mrb[13].mxu1 }
 0x576   :  { %v992_v43 = vpop.f32.mrb[14].mxu1 }
 0x577   :  { %581 = vrot.lane.b32.xlu1 %v579_v63, %s2831_s30  ;;  %v993_v44 = vadd.f32 %v992_v43, %v919_v41  ;;  %v2563_v45 = vpop.f32.mrb[15].mxu1  ;;  %v2372_v63 = vld [vmem:[%s3262_s0 + $0x8] sm:$0x3] }
 0x579   :  { %v996_v50 = vadd.f32 %v2981_v23, %v993_v44 }
 0x5e9   :  { %v582_v4 = vpop.permute.xlu1 %581 }
 0x5ea   :  { %v584_v8 = vmul.f32 %v2759_v57, %v582_v4 }
 0x5ec   :  { %586 = vrot.lane.b32.xlu0 %v584_v8, %s2830_s5 }
 0x65e   :  { %v587_v9 = vpop.permute.xlu0 %586 }
 0x65f   :  { %v589_v10 = vadd.f32 %v2761_v62, %v587_v9  ;;  %v2373_v62 = vld [vmem:[%s3263_s1 + $0x8] sm:$0x3] }
 0x660   :  { %2578 = vmatmul.mubr.msk.f32.vlgmr.msra.gmra.mrb[16].mxu1 %vm55_vm2, %v2373_v62 }
 0x661   :  { %742 = vrot.lane.b32.xlu1 %v589_v10, %s2829_s6  ;;  %2581 = vmatpush3.msk.msra.mxu1 %vm137_vm3, %v2928_v7 }
 0x662   :  { %2582 = vmatprep.mubr.msk.f32.mxu1 %vm2827_vm1, %v2826_v1  ;;  %2596 = vmatprep.subr.mxu1 %v2826_v1 }
 0x664   :  { %2583 = vmatmul.mubr.msk.f32.vlgmr.msra.gmra.mrb[18].mxu1 %vm133_vm4, %v2372_v63 }
 0x665   :  { %2597 = vmatpush3.msk.msra.mxu1 %vm59_vm0, %v2906_v0  ;;  %2598 = vmatprep.mubr.msk.f32.mxu1 %vm2827_vm1, %v2826_v1 }
 0x666   :  { %2601 = vmatprep.subr.mxu1 %v2826_v1 }
 0x6d3   :  { %v743_v17 = vpop.permute.xlu1 %742 }
 0x6d4   :  { %2552 = vmatmul.mubr.msk.f32.vlgmr.msra.gmra.mrb[4].mxu0 %vm218_vm5, %v743_v17 }
 0x6d5   :  { %2703 = vmatpush3.bf16.msra.mxu0 %v2923_v6  ;;  %2572 = vmatprep.mubr.msk.f32.mxu0 %vm2827_vm1, %v2826_v1 }
 0x6d6   :  { %2704 = vmatprep.subr.bf16.mxu0 %v2828_v5 }
 0x6d9   :  { %2706 = vmatpush3.bf16.msra.mxu0 %v2947_v12 }
 0x6da   :  { %2707 = vmatprep.subr.bf16.mxu0 %v2828_v5 }
 0x733   :  { %v1175_v9 = vpop.f32.mrb[16].mxu1 }
 0x7a7   :  { %v812_v18 = vpop.f32.mrb[4].mxu0 }
 0x7a8   :  { %v823_v20 = vadd.f32 %v812_v18, %v2974_v19  ;;  %v2553_v21 = vpop.f32.mrb[5].mxu0  ;;  %v816_v24 = vadd.f32 %v812_v18, %v740_v22 }
 0x7aa   :  { %825 = vrot.lane.b32.xlu0 %v823_v20, %s2829_s6  ;;  %v2363_v25 = vmul.f32 -1.442695, %v816_v24 }
 0x7ac   :  { %2762 = vpow2.f32 %v2363_v25 }
 0x7b6   :  { %v2763_v26 = vpop.eup %2762 }
 0x7b7   :  { %v820_v27 = vadd.f32 1.0, %v2763_v26 }
 0x7b9   :  { %2764 = vrcp.f32 %v820_v27 }
 0x7c3   :  { %v2765_v28 = vpop.eup %2764 }
 0x81c   :  { %v826_v29 = vpop.permute.xlu0 %825 }
 0x81d   :  { %v828_v30 = vmul.f32 %v2765_v28, %v826_v29 }
 0x81f   :  { %830 = vrot.lane.b32.xlu1 %v828_v30, %s2829_s6 }
 0x891   :  { %v831_v31 = vpop.permute.xlu1 %830 }
 0x892   :  { %v833_v32 = vadd.f32 %v831_v31, %v740_v22 }
 0x894   :  { %2766 = vtanh.f32 %v833_v32 }
 0x89e   :  { %v2767_v33 = vpop.eup %2766 }
 0x89f   :  { %v835_v34 = vsub.f32 %v589_v10, %v2767_v33  ;;  %v2579_v10 = vpop.f32.mrb[17].mxu1 }
 0x8a0   :  { %v1248_v11 = vpop.f32.mrb[18].mxu1 }
 0x8a1   :  { %837 = vrot.lane.b32.xlu0 %v835_v34, %s2831_s30  ;;  %v1249_v13 = vadd.f32 %v1248_v11, %v1175_v9  ;;  %v2584_v14 = vpop.f32.mrb[19].mxu1  ;;  %v2380_v34 = vld [vmem:[%s3262_s0 + $0xa] sm:$0x3] }
 0x8a3   :  { %v1252_v20 = vadd.f32 %v2981_v23, %v1249_v13 }
 0x913   :  { %v838_v37 = vpop.permute.xlu0 %837 }
 0x914   :  { %v840_v38 = vmul.f32 %v2765_v28, %v838_v37 }
 0x916   :  { %842 = vrot.lane.b32.xlu1 %v840_v38, %s2830_s5 }
 0x988   :  { %v843_v39 = vpop.permute.xlu1 %842 }
 0x989   :  { %v845_v40 = vadd.f32 %v2767_v33, %v843_v39  ;;  %v2381_v33 = vld [vmem:[%s3263_s1 + $0xa] sm:$0x3] }
 0x98a   :  { %2599 = vmatmul.mubr.msk.f32.vlgmr.msra.gmra.mrb[20].mxu1 %vm55_vm2, %v2381_v33 }
 0x98b   :  { %998 = vrot.lane.b32.xlu0 %v845_v40, %s2829_s6  ;;  %2602 = vmatpush3.msk.msra.mxu1 %vm137_vm3, %v2928_v7 }
 0x98c   :  { %2603 = vmatprep.mubr.msk.f32.mxu1 %vm2827_vm1, %v2826_v1  ;;  %2617 = vmatprep.subr.mxu1 %v2826_v1 }
 0x98e   :  { %2604 = vmatmul.mubr.msk.f32.vlgmr.msra.gmra.mrb[22].mxu1 %vm133_vm4, %v2380_v34 }
 0x98f   :  { %2618 = vmatpush3.msk.msra.mxu1 %vm59_vm0, %v2906_v0  ;;  %2619 = vmatprep.mubr.msk.f32.mxu1 %vm2827_vm1, %v2826_v1 }
 0x990   :  { %2622 = vmatprep.subr.mxu1 %v2826_v1 }
 0x9fd   :  { %v999_v46 = vpop.permute.xlu0 %998 }
 0x9fe   :  { %2573 = vmatmul.mubr.msk.f32.vlgmr.msra.gmra.mrb[6].mxu0 %vm218_vm5, %v999_v46 }
 0x9ff   :  { %2709 = vmatpush3.bf16.msra.mxu0 %v2923_v6  ;;  %2593 = vmatprep.mubr.msk.f32.mxu0 %vm2827_vm1, %v2826_v1 }
 0xa00   :  { %2710 = vmatprep.subr.bf16.mxu0 %v2828_v5 }
 0xa03   :  { %2712 = vmatpush3.bf16.msra.mxu0 %v2947_v12 }
 0xa04   :  { %2713 = vmatprep.subr.bf16.mxu0 %v2828_v5 }
 0xa5d   :  { %v1431_v39 = vpop.f32.mrb[20].mxu1 }
 0xad1   :  { %v1068_v47 = vpop.f32.mrb[6].mxu0 }
 0xad2   :  { %v1079_v48 = vadd.f32 %v1068_v47, %v2974_v19  ;;  %v2574_v49 = vpop.f32.mrb[7].mxu0  ;;  %v1072_v51 = vadd.f32 %v1068_v47, %v996_v50 }
 0xad4   :  { %1081 = vrot.lane.b32.xlu1 %v1079_v48, %s2829_s6  ;;  %v2371_v52 = vmul.f32 -1.442695, %v1072_v51 }
 0xad6   :  { %2768 = vpow2.f32 %v2371_v52 }
 0xae0   :  { %v2769_v53 = vpop.eup %2768 }
 0xae1   :  { %v1076_v54 = vadd.f32 1.0, %v2769_v53 }
 0xae3   :  { %2770 = vrcp.f32 %v1076_v54 }
 0xaed   :  { %v2771_v55 = vpop.eup %2770 }
 0xb46   :  { %v1082_v56 = vpop.permute.xlu1 %1081 }
 0xb47   :  { %v1084_v57 = vmul.f32 %v2771_v55, %v1082_v56 }
 0xb49   :  { %1086 = vrot.lane.b32.xlu0 %v1084_v57, %s2829_s6 }
 0xbbb   :  { %v1087_v58 = vpop.permute.xlu0 %1086 }
 0xbbc   :  { %v1089_v59 = vadd.f32 %v1087_v58, %v996_v50 }
 0xbbe   :  { %2772 = vtanh.f32 %v1089_v59 }
 0xbc8   :  { %v2773_v60 = vpop.eup %2772 }
 0xbc9   :  { %v1091_v61 = vsub.f32 %v845_v40, %v2773_v60  ;;  %v2600_v40 = vpop.f32.mrb[21].mxu1 }
 0xbca   :  { %v1504_v41 = vpop.f32.mrb[22].mxu1 }
 0xbcb   :  { %1093 = vrot.lane.b32.xlu1 %v1091_v61, %s2831_s30  ;;  %v1505_v42 = vadd.f32 %v1504_v41, %v1431_v39  ;;  %v2605_v43 = vpop.f32.mrb[23].mxu1  ;;  %v2388_v61 = vld [vmem:[%s3262_s0 + $0xc] sm:$0x3] }
 0xbcd   :  { %v1508_v48 = vadd.f32 %v2981_v23, %v1505_v42 }
 0xc3d   :  { %v1094_v2 = vpop.permute.xlu1 %1093 }
 0xc3e   :  { %v1096_v3 = vmul.f32 %v2771_v55, %v1094_v2 }
 0xc40   :  { %1098 = vrot.lane.b32.xlu0 %v1096_v3, %s2830_s5 }
 0xcb2   :  { %v1099_v4 = vpop.permute.xlu0 %1098 }
 0xcb3   :  { %v1101_v8 = vadd.f32 %v2773_v60, %v1099_v4  ;;  %v2389_v60 = vld [vmem:[%s3263_s1 + $0xc] sm:$0x3] }
 0xcb4   :  { %2620 = vmatmul.mubr.msk.f32.vlgmr.msra.gmra.mrb[24].mxu1 %vm55_vm2, %v2389_v60  ;;  %v2143_v60 = vld [vmem:[%s3270_s8 + $0x8] sm:$0xff] }
 0xcb5   :  { %1254 = vrot.lane.b32.xlu1 %v1101_v8, %s2829_s6  ;;  %2623 = vmatpush3.msk.msra.mxu1 %vm137_vm3, %v2928_v7 }
 0xcb6   :  { %2624 = vmatprep.mubr.msk.f32.mxu1 %vm2827_vm1, %v2826_v1  ;;  %2638 = vmatprep.subr.mxu1 %v2826_v1 }
 0xcb8   :  { %2625 = vmatmul.mubr.msk.f32.vlgmr.msra.gmra.mrb[26].mxu1 %vm133_vm4, %v2388_v61  ;;  %v2144_v61 = vld [vmem:[%s3270_s8 + $0x10] sm:$0xff] }
 0xcb9   :  { %2639 = vmatpush3.msk.msra.mxu1 %vm59_vm0, %v2906_v0  ;;  %2640 = vmatprep.mubr.msk.f32.mxu1 %vm2827_vm1, %v2826_v1 }
 0xcba   :  { %2643 = vmatprep.subr.mxu1 %v2826_v1 }
 0xd27   :  { %v1255_v15 = vpop.permute.xlu1 %1254 }
 0xd28   :  { %2594 = vmatmul.mubr.msk.f32.vlgmr.msra.gmra.mrb[8].mxu0 %vm218_vm5, %v1255_v15 }
 0xd29   :  { %2715 = vmatpush3.bf16.msra.mxu0 %v2923_v6  ;;  %2614 = vmatprep.mubr.msk.f32.mxu0 %vm2827_vm1, %v2826_v1 }
 0xd2a   :  { %2716 = vmatprep.subr.bf16.mxu0 %v2828_v5 }
 0xd2d   :  { %2718 = vmatpush3.bf16.msra.mxu0 %v2947_v12 }
 0xd2e   :  { %2719 = vmatprep.subr.bf16.mxu0 %v2828_v5 }
 0xd87   :  { %v1687_v4 = vpop.f32.mrb[24].mxu1 }
 0xdfb   :  { %v1324_v16 = vpop.f32.mrb[8].mxu0 }
 0xdfc   :  { %v1335_v17 = vadd.f32 %v1324_v16, %v2974_v19  ;;  %v2595_v18 = vpop.f32.mrb[9].mxu0  ;;  %v1328_v21 = vadd.f32 %v1324_v16, %v1252_v20 }
 0xdfe   :  { %1337 = vrot.lane.b32.xlu0 %v1335_v17, %s2829_s6  ;;  %v2379_v22 = vmul.f32 -1.442695, %v1328_v21 }
 0xe00   :  { %2774 = vpow2.f32 %v2379_v22 }
 0xe0a   :  { %v2775_v24 = vpop.eup %2774 }
 0xe0b   :  { %v1332_v25 = vadd.f32 1.0, %v2775_v24 }
 0xe0d   :  { %2776 = vrcp.f32 %v1332_v25 }
 0xe17   :  { %v2777_v26 = vpop.eup %2776 }
 0xe70   :  { %v1338_v27 = vpop.permute.xlu0 %1337 }
 0xe71   :  { %v1340_v28 = vmul.f32 %v2777_v26, %v1338_v27 }
 0xe73   :  { %1342 = vrot.lane.b32.xlu1 %v1340_v28, %s2829_s6  ;;  %v2397_v28 = vld [vmem:[%s3263_s1 + $0xe] sm:$0x3] }
 0xe74   :  { %2641 = vmatmul.mubr.msk.f32.vlgmr.msra.gmra.mrb[28].mxu1 %vm55_vm2, %v2397_v28 }
 0xe75   :  { %2644 = vmatpush3.msk.msra.mxu1 %vm137_vm3, %v2928_v7  ;;  %2645 = vmatprep.mubr.msk.f32.mxu1 %vm2827_vm1, %v2826_v1 }
 0xe76   :  { %2731 = vmatprep.subr.bf16.mxu1 %v2828_v5 }
 0xee5   :  { %v1343_v29 = vpop.permute.xlu1 %1342 }
 0xee6   :  { %v1345_v30 = vadd.f32 %v1343_v29, %v1252_v20  ;;  %v2396_v29 = vld [vmem:[%s3262_s0 + $0xe] sm:$0x3] }
 0xee7   :  { %2646 = vmatmul.mubr.msk.f32.vlgmr.msra.gmra.mrb[30].mxu1 %vm133_vm4, %v2396_v29 }
 0xee8   :  { %2778 = vtanh.f32 %v1345_v30  ;;  %2667 = vmatprep.mubr.msk.f32.mxu1 %vm2827_vm1, %v2826_v1 }
 0xef2   :  { %v2779_v31 = vpop.eup %2778 }
 0xef3   :  { %v1347_v32 = vsub.f32 %v1101_v8, %v2779_v31  ;;  %v2621_v8 = vpop.f32.mrb[25].mxu1 }
 0xef4   :  { %v1760_v9 = vpop.f32.mrb[26].mxu1  ;;  %v2230_v8 = vld [vmem:[%s3272_s10 + $0x8] sm:$0xff] }
 0xef5   :  { %1349 = vrot.lane.b32.xlu0 %v1347_v32, %s2831_s30  ;;  %v1761_v10 = vadd.f32 %v1760_v9, %v1687_v4  ;;  %v2626_v11 = vpop.f32.mrb[27].mxu1  ;;  %v2229_v4 = vld [vmem:[%s3272_s10] sm:$0xff] }
 0xef6   :  { %v2738_v9 = vpack.c.bf16 %v2230_v8, %v2229_v4 }
 0xef7   :  { %v1764_v16 = vadd.f32 %v2981_v23, %v1761_v10 }
 0xf47   :  { %v1943_v33 = vpop.f32.mrb[28].mxu1 }
 0xf48   :  { %v2642_v34 = vpop.f32.mrb[29].mxu1 }
 0xf67   :  { %v1350_v35 = vpop.permute.xlu0 %1349 }
 0xf68   :  { %v1352_v36 = vmul.f32 %v2777_v26, %v1350_v35 }
 0xf6a   :  { %1354 = vrot.lane.b32.xlu1 %v1352_v36, %s2830_s5 }
 0xfba   :  { %v2016_v35 = vpop.f32.mrb[30].mxu1 }
 0xfbb   :  { %v2017_v36 = vadd.f32 %v2016_v35, %v1943_v33 }
 0xfbd   :  { %v2020_v42 = vadd.f32 %v2981_v23, %v2017_v36 }
 0xfdc   :  { %v1355_v37 = vpop.permute.xlu1 %1354 }
 0xfdd   :  { %v1357_v38 = vadd.f32 %v2779_v31, %v1355_v37  ;;  %v2647_v37 = vpop.f32.mrb[31].mxu1 }
 0xfdf   :  { %1510 = vrot.lane.b32.xlu0 %v1357_v38, %s2829_s6 }
0x1051   :  { %v1511_v44 = vpop.permute.xlu0 %1510 }
0x1052   :  { %2615 = vmatmul.mubr.msk.f32.vlgmr.msra.gmra.mrb[10].mxu0 %vm218_vm5, %v1511_v44 }
0x1053   :  { %2721 = vmatpush3.bf16.msra.mxu0 %v2923_v6  ;;  %2635 = vmatprep.mubr.msk.f32.mxu0 %vm2827_vm1, %v2826_v1 }
0x1054   :  { %2722 = vmatprep.subr.bf16.mxu0 %v2828_v5 }
0x1057   :  { %2724 = vmatpush3.bf16.msra.mxu0 %v2947_v12 }
0x1058   :  { %2725 = vmatprep.subr.bf16.mxu0 %v2828_v5 }
0x1125   :  { %v1580_v45 = vpop.f32.mrb[10].mxu0 }
0x1126   :  { %v1591_v46 = vadd.f32 %v1580_v45, %v2974_v19  ;;  %v2616_v47 = vpop.f32.mrb[11].mxu0  ;;  %v1584_v49 = vadd.f32 %v1580_v45, %v1508_v48 }
0x1128   :  { %1593 = vrot.lane.b32.xlu1 %v1591_v46, %s2829_s6  ;;  %v2387_v50 = vmul.f32 -1.442695, %v1584_v49 }
0x112a   :  { %2780 = vpow2.f32 %v2387_v50 }
0x1134   :  { %v2781_v51 = vpop.eup %2780 }
0x1135   :  { %v1588_v52 = vadd.f32 1.0, %v2781_v51 }
0x1137   :  { %2782 = vrcp.f32 %v1588_v52 }
0x1141   :  { %v2783_v53 = vpop.eup %2782 }
0x119a   :  { %v1594_v54 = vpop.permute.xlu1 %1593 }
0x119b   :  { %v1596_v55 = vmul.f32 %v2783_v53, %v1594_v54 }
0x119d   :  { %1598 = vrot.lane.b32.xlu0 %v1596_v55, %s2829_s6 }
0x120f   :  { %v1599_v56 = vpop.permute.xlu0 %1598 }
0x1210   :  { %v1601_v57 = vadd.f32 %v1599_v56, %v1508_v48 }
0x1212   :  { %2784 = vtanh.f32 %v1601_v57 }
0x121c   :  { %v2785_v58 = vpop.eup %2784 }
0x121d   :  { %v1603_v59 = vsub.f32 %v1357_v38, %v2785_v58 }
0x121f   :  { %1605 = vrot.lane.b32.xlu1 %v1603_v59, %s2831_s30  ;;  %v2142_v59 = vld [vmem:[%s3270_s8] sm:$0xff] }
0x1291   :  { %v1606_v62 = vpop.permute.xlu1 %1605 }
0x1292   :  { %v1608_v63 = vmul.f32 %v2783_v53, %v1606_v62  ;;  %v2732_v62 = vpack.c.bf16 %v2143_v60, %v2142_v59 }
0x1294   :  { %1610 = vrot.lane.b32.xlu0 %v1608_v63, %s2830_s5  ;;  %v2145_v63 = vld [vmem:[%s3270_s8 + $0x18] sm:$0xff]  ;;  %2733 = vmatpush3.bf16.msra.mxu1 %v2732_v62 }
0x1295   :  { %2734 = vmatprep.subr.bf16.mxu1 %v2828_v5 }
0x1306   :  { %v1611_v2 = vpop.permute.xlu0 %1610 }
0x1307   :  { %v1613_v3 = vadd.f32 %v2785_v58, %v1611_v2  ;;  %v2735_v2 = vpack.c.bf16 %v2145_v63, %v2144_v61 }
0x1309   :  { %1766 = vrot.lane.b32.xlu1 %v1613_v3, %s2829_s6  ;;  %2736 = vmatpush3.bf16.msra.mxu1 %v2735_v2 }
0x137b   :  { %v1767_v13 = vpop.permute.xlu1 %1766 }
0x137c   :  { %2636 = vmatmul.mubr.msk.f32.vlgmr.msra.gmra.mrb[12].mxu0 %vm218_vm5, %v1767_v13 }
0x137d   :  { %2727 = vmatpush3.bf16.msra.mxu0 %v2923_v6  ;;  %2656 = vmatprep.mubr.msk.f32.mxu0 %vm2827_vm1, %v2826_v1 }
0x137e   :  { %2728 = vmatprep.subr.bf16.mxu0 %v2828_v5 }
0x1381   :  { %2730 = vmatpush3.bf16.msra.mxu0 %v2947_v12 }
0x1382   :  { %2737 = vmatprep.subr.bf16.mxu0 %v2828_v5 }
0x144f   :  { %v1836_v0 = vpop.f32.mrb[12].mxu0 }
0x1450   :  { %v1847_v14 = vadd.f32 %v1836_v0, %v2974_v19  ;;  %v2637_v15 = vpop.f32.mrb[13].mxu0  ;;  %v1840_v17 = vadd.f32 %v1836_v0, %v1764_v16 }
0x1452   :  { %1849 = vrot.lane.b32.xlu0 %v1847_v14, %s2829_s6  ;;  %v2395_v18 = vmul.f32 -1.442695, %v1840_v17  ;;  %v2231_v14 = vld [vmem:[%s3272_s10 + $0x10] sm:$0xff]  ;;  %v2404_v17 = vld [vmem:[%s3271_s9] ss:$0 sm:$0xff] }
0x1454   :  { %2786 = vpow2.f32 %v2395_v18 }
0x145e   :  { %v2787_v6 = vpop.eup %2786 }
0x145f   :  { %v1844_v20 = vadd.f32 1.0, %v2787_v6 }
0x1461   :  { %2788 = vrcp.f32 %v1844_v20 }
0x146b   :  { %v2789_v21 = vpop.eup %2788 }
0x14c4   :  { %v1850_v22 = vpop.permute.xlu0 %1849 }
0x14c5   :  { %v1852_v24 = vmul.f32 %v2789_v21, %v1850_v22 }
0x14c7   :  { %1854 = vrot.lane.b32.xlu1 %v1852_v24, %s2829_s6 }
0x1539   :  { %v1855_v12 = vpop.permute.xlu1 %1854 }
0x153a   :  { %v1857_v25 = vadd.f32 %v1855_v12, %v1764_v16  ;;  %v2233_v16 = vld [vmem:[%s3272_s10 + $0x20] sm:$0xff] }
0x153c   :  { %2790 = vtanh.f32 %v1857_v25 }
0x1546   :  { %v2791_v26 = vpop.eup %2790 }
0x1547   :  { %v1859_v27 = vsub.f32 %v1613_v3, %v2791_v26 }
0x1549   :  { %1861 = vrot.lane.b32.xlu0 %v1859_v27, %s2831_s30 }
0x15bb   :  { %v1862_v30 = vpop.permute.xlu0 %1861 }
0x15bc   :  { %v1864_v31 = vmul.f32 %v2789_v21, %v1862_v30 }
0x15be   :  { %1866 = vrot.lane.b32.xlu1 %v1864_v31, %s2830_s5 }
0x1630   :  { %v1867_v32 = vpop.permute.xlu1 %1866 }
0x1631   :  { %v1869_v7 = vadd.f32 %v2791_v26, %v1867_v32 }
0x1633   :  { %2022 = vrot.lane.b32.xlu0 %v1869_v7, %s2829_s6 }
0x16a5   :  { %v2023_v38 = vpop.permute.xlu0 %2022 }
0x16a6   :  { %2657 = vmatmul.mubr.msk.f32.vlgmr.msra.gmra.mrb[14].mxu0 %vm218_vm5, %v2023_v38 }
0x16a7   :  { %2680 = vmatprep.mubr.msk.f32.mxu0 %vm2827_vm1, %v2826_v1  ;;  %2739 = vmatpush3.bf16.msra.mxu0 %v2738_v9 }
0x16a8   :  { %2740 = vmatprep.subr.bf16.mxu0 %v2828_v5  ;;  %v2232_v5 = vld [vmem:[%s3272_s10 + $0x18] sm:$0xff] }
0x16a9   :  { %v2741_v15 = vpack.c.bf16 %v2232_v5, %v2231_v14 }
0x16ab   :  { %2742 = vmatpush3.bf16.msra.mxu0 %v2741_v15 }
0x16ac   :  { %2678 = vmatprep.subr.mxu0 %v2826_v1 }
0x16af   :  { %2679 = vmatpush3.msra.mxu0 %v2233_v16 }
0x1779   :  { %v2092_v39 = vpop.f32.mrb[14].mxu0 }
0x177a   :  { %v2103_v40 = vadd.f32 %v2092_v39, %v2974_v19  ;;  %v2658_v41 = vpop.f32.mrb[15].mxu0  ;;  %v2096_v43 = vadd.f32 %v2092_v39, %v2020_v42 }
0x177c   :  { %2105 = vrot.lane.b32.xlu1 %v2103_v40, %s2829_s6  ;;  %v2403_v44 = vmul.f32 -1.442695, %v2096_v43 }
0x177e   :  { %2792 = vpow2.f32 %v2403_v44 }
0x1788   :  { %v2793_v45 = vpop.eup %2792 }
0x1789   :  { %v2100_v46 = vadd.f32 1.0, %v2793_v45 }
0x178b   :  { %2794 = vrcp.f32 %v2100_v46 }
0x1795   :  { %v2795_v47 = vpop.eup %2794 }
0x17ee   :  { %v2106_v48 = vpop.permute.xlu1 %2105 }
0x17ef   :  { %v2108_v49 = vmul.f32 %v2795_v47, %v2106_v48 }
0x17f1   :  { %2110 = vrot.lane.b32.xlu0 %v2108_v49, %s2829_s6 }
0x1863   :  { %v2111_v50 = vpop.permute.xlu0 %2110 }
0x1864   :  { %v2113_v51 = vadd.f32 %v2111_v50, %v2020_v42 }
0x1866   :  { %2796 = vtanh.f32 %v2113_v51 }
0x1870   :  { %v2797_v19 = vpop.eup %2796 }
0x1871   :  { %v2115_v52 = vsub.f32 %v1869_v7, %v2797_v19 }
0x1873   :  { %2117 = vrot.lane.b32.xlu1 %v2115_v52, %s2831_s30 }
0x18e5   :  { %v2118_v53 = vpop.permute.xlu1 %2117 }
0x18e6   :  { %v2120_v23 = vmul.f32 %v2795_v47, %v2118_v53 }
0x18e8   :  { %2122 = vrot.lane.b32.xlu0 %v2120_v23, %s2830_s5 }
0x195a   :  { %v2123_v54 = vpop.permute.xlu0 %2122 }
0x195b   :  { %v2125_v55 = vadd.f32 %v2797_v19, %v2123_v54 }
0x195d   :  { %v2132_v56 = vmul.f32 %v2125_v55, %v2125_v55 }
0x195f   :  { %2134 = vrot.lane.b32.xlu1 %v2132_v56, %s2829_s6 }
0x19d1   :  { %v2135_v57 = vpop.permute.xlu1 %2134 }
0x19d2   :  { %v2137_v58 = vsel %vm2130_vm6, %v2135_v57, 0.0 }
0x19d3   :  { %2138 = vadd.xlane.f32.xlu0 %v2137_v58 }
0x1a60   :  { %v2139_v3 = vpop.xlane.xlu0 %2138 }
0x1a61   :  { %2798 = vrsqrt.f32 %v2139_v3 }
0x1a6b   :  { %v2799_v10 = vpop.eup %2798 }
0x1a6c   :  { %v2141_v11 = vmul.f32 %v2799_v10, %v2125_v55 }
0x1a6e   :  { %2154 = vrot.lane.b32.xlu1 %v2141_v11, %s2829_s6 }
0x1a72   :  { %2127 = vrot.lane.b32.xlu1 %v2125_v55, %s2829_s6 }
0x1ae0   :  { %v2155_v13 = vpop.permute.xlu1 %2154 }
0x1ae1   :  { %2668 = vmatmul.mubr.msk.f32.vlgmr.msra.gmra.mrb[32].mxu1 %vm218_vm5, %v2155_v13 }
0x1ae4   :  { %v2128_v0 = vpop.permute.xlu1 %2127 }
0x1ae5   :  { %2131 = vst.msk [vmem:[#allocation2] sm:$0x3] %vm2130_vm6, %v2128_v0 }
0x1bb4   :  { %v2224_v18 = vpop.f32.mrb[32].mxu1 }
0x1bb5   :  { %v2225_v6 = vadd.f32 %v2404_v17, %v2224_v18  ;;  %v2669_v20 = vpop.f32.mrb[33].mxu1 }
0x1bb7   :  { %v2228_v21 = vmax.f32 %v2225_v6, 0.0 }
0x1bb9   :  { %2681 = vmatmul.mubr.msk.f32.vlgmr.msra.gmra.mrb[16].mxu0 %vm2241_vm7, %v2228_v21 }
0x1bba   :  { %2813 = shalt.err (!%p2810_p4)
}
0x1bbb   :  { %s2814_s9 = scalar_lea.hbm %s3274_s12, 32 }
0x1bbc   :  { %p2815_p5 = scmp.ne.s32.totalorder %s3274_s12, %s2814_s9  ;;  %p2818_p6 = scmp.lt.u32.totalorder %s2814_s9, %s3274_s12 }
0x1bbe   :  { %p2820_p7 = pnand %p2818_p6, %p2815_p5 }
0x1bc0   :  { %2823 = shalt.err (!%p2820_p7)
}
0x1bc1   :  { %2331 = dma.vmem_to_hbm [thread:$0]  %s2329_s29, 32, %s3274_s12, [#allocation3]   ;;  %v2406_v1 = vld [vmem:[%s3273_s11] ss:$0 sm:$0xff]  ;;  %v2315_v25 = vlaneseq  ;;  %vm2320_vm9 = vcmask 25600  }
0x1bc3   :  { %v2316_v26 = vand.u32 127, %v2315_v25 }
0x1bc5   :  { %vm2317_vm8 = vcmp.eq.s32.totalorder %v2316_v26, 2 }
0x1c8c   :  { %v2311_v22 = vpop.f32.mrb[16].mxu0 }
0x1c8d   :  { %v2312_v24 = vadd.f32 %v2406_v1, %v2311_v22  ;;  %v2682_v12 = vpop.f32.mrb[17].mxu0 }
0x1c8f   :  { %2800 = vtanh.f32 %v2312_v24 }
0x1c99   :  { %v2801_v27 = vpop.eup %2800 }
0x1c9a   :  { %v2319_v28 = vsel %vm2317_vm8, %v2801_v27, %v2312_v24 }
0x1c9b   :  { %2321 = vst.msk [vmem:[%s3275_s13] sm:$0x3] %vm2320_vm9, %v2319_v28 }
0x1c9c   :  { %2824 = dma.done.wait [#allocation3], 32  }
0x1c9d   :  { %2825 = vsyncadd [#allocation3], 4294967264 }
0x1c9e   :  { %2339 = vsyncpa [#allocation3], 1 }

</bundles_post_ra>
